<compile_context>
chip_gen: v5e
topology: v5e:2x2
jax: 0.10.0
libtpu: 0.0.40
codegen_flags: <defaults>
</compile_context>

<pallas_src>
import functools

import jax
import jax.numpy as jnp
from jax.experimental import pallas as pl
from jax.experimental.pallas import tpu as pltpu


def _gru_disc_kernel(num_layers, hidden_dim, seq_len, input_dim, x_ref, *args):
    """args = [w_0, b_0, ..., w_{L-1}, b_{L-1}, head_ref, out_ref].

    Per-layer packed operands (host-side layout, see discriminator_forward):
      w_l : (in_l + H, 3H)  rows [0:in_l] = W_ih (gate order r|z|n),
                            rows [in_l:]  = W_hh
      b_l : (2, 3H)         row 0 = b_ih + [b_hh_r | b_hh_z | 0]   (folded)
                            row 1 = [0 | 0 | b_hh_n]               (in-loop)
    head  : (1, H + 1)      [fc_w | fc_b]
    """
    H = hidden_dim
    H2 = 2 * H
    n_layer_refs = 2 * num_layers
    layer_refs = args[:n_layer_refs]
    head_ref, out_ref = args[n_layer_refs:]

    prev = None          # previous layer's per-timestep outputs (vreg values)
    h = None
    for l in range(num_layers):
        in_l = input_dim if l == 0 else H
        w_ref = layer_refs[2 * l]
        b_ref = layer_refs[2 * l + 1]
        wih = w_ref[0:in_l, :]             # (in_l, 3H)
        whh = w_ref[in_l:in_l + H, :]      # (H, 3H)
        gib = b_ref[0:1, :]                # (1, 3H) folded projection bias
        bhn = b_ref[1:2, :]                # (1, 3H) b_hh_n in n lanes, else 0

        if l == 0:
            # Hoisted batched input projection (off the recurrence chain).
            gi_all = jnp.dot(x_ref[...], wih,
                             preferred_element_type=jnp.float32) + gib

        h = jnp.zeros((1, H), jnp.float32)
        outs = []
        for t in range(seq_len):           # fully unrolled: static indices
            if l == 0:
                gi_t = gi_all[t:t + 1, :]
            else:
                # Depends only on prev[t] -> wavefront: layer l step t can
                # co-issue with layer l-1 step t+1 (single basic block).
                gi_t = jnp.dot(prev[t], wih,
                               preferred_element_type=jnp.float32) + gib
            gh = jnp.dot(h, whh, preferred_element_type=jnp.float32) + bhn
            rz = jax.nn.sigmoid(gi_t[:, :H2] + gh[:, :H2])
            r = rz[:, :H]
            z = rz[:, H:]
            n = jnp.tanh(gi_t[:, H2:] + r * gh[:, H2:])
            h = n + z * (h - n)            # == (1 - z) * n + z * h
            outs.append(h)
        prev = outs

    # fc(out[:, -1, :]) as VPU mul + lane reduction (no 1-lane MXU drain).
    head = head_ref[...]                   # (1, H + 1)
    out_ref[...] = (jnp.sum(h * head[:, :H], axis=-1, keepdims=True)
                    + head[:, H:])


def discriminator_forward(x, params, *, hidden_dim, num_layers):
    seq_len, input_dim = x.shape
    H = hidden_dim

    # Host-side re-layout / packing (see kernel docstring).
    flat_inputs = [x]
    for l in range(num_layers):
        w_ih = params[f"w_ih_{l}"]          # (in_l, 3H), gate order [r, z, n]
        w_hh = params[f"w_hh_{l}"]          # (H,   3H)
        b_ih = params[f"b_ih_{l}"]          # (1,   3H)
        b_hh = params[f"b_hh_{l}"]          # (1,   3H)
        gi_bias = b_ih + b_hh.at[:, 2 * H:].set(0.0)          # fold r/z only
        bhn_row = jnp.zeros_like(b_hh).at[:, 2 * H:].set(b_hh[:, 2 * H:])
        flat_inputs.append(jnp.concatenate([w_ih, w_hh], axis=0))
        flat_inputs.append(jnp.concatenate([gi_bias, bhn_row], axis=0))
    head = jnp.concatenate(
        [params["fc_w"].reshape(1, H), params["fc_b"].reshape(1, 1)], axis=1)
    flat_inputs.append(head)

    vmem = pl.BlockSpec(memory_space=pltpu.MemorySpace.VMEM)
    kernel = functools.partial(
        _gru_disc_kernel, num_layers, hidden_dim, seq_len, input_dim)

    return pl.pallas_call(
        kernel,
        out_shape=jax.ShapeDtypeStruct((1, 1), jnp.float32),
        in_specs=[vmem] * len(flat_inputs),
        out_specs=vmem,
    )(*flat_inputs)


def init_params(key, input_dim, hidden_dim, num_layers):
    """Deterministic init mimicking PyTorch GRU/Linear shapes (pre-transposed)."""
    params = {}
    k = 1.0 / jnp.sqrt(hidden_dim)
    keys = jax.random.split(key, num_layers * 4 + 2)
    idx = 0
    for l in range(num_layers):
        in_l = input_dim if l == 0 else hidden_dim
        params[f"w_ih_{l}"] = jax.random.uniform(
            keys[idx], (in_l, 3 * hidden_dim), jnp.float32, -k, k); idx += 1
        params[f"w_hh_{l}"] = jax.random.uniform(
            keys[idx], (hidden_dim, 3 * hidden_dim), jnp.float32, -k, k); idx += 1
        params[f"b_ih_{l}"] = jax.random.uniform(
            keys[idx], (1, 3 * hidden_dim), jnp.float32, -k, k); idx += 1
        params[f"b_hh_{l}"] = jax.random.uniform(
            keys[idx], (1, 3 * hidden_dim), jnp.float32, -k, k); idx += 1
    params["fc_w"] = jax.random.uniform(
        keys[idx], (hidden_dim, 1), jnp.float32, -k, k); idx += 1
    params["fc_b"] = jax.random.uniform(
        keys[idx], (1, 1), jnp.float32, -k, k)
    return params


def reference_forward(x, params, *, hidden_dim, num_layers):
    """Pure-JAX reference of the same GRU + Linear semantics."""
    H = hidden_dim
    seq = x
    for l in range(num_layers):
        w_ih, w_hh = params[f"w_ih_{l}"], params[f"w_hh_{l}"]
        b_ih, b_hh = params[f"b_ih_{l}"], params[f"b_hh_{l}"]
        h = jnp.zeros((1, H), jnp.float32)
        outs = []
        for t in range(seq.shape[0]):
            xt = seq[t:t + 1, :]
            gi = xt @ w_ih + b_ih
            gh = h @ w_hh + b_hh
            r = jax.nn.sigmoid(gi[:, :H] + gh[:, :H])
            z = jax.nn.sigmoid(gi[:, H:2 * H] + gh[:, H:2 * H])
            n = jnp.tanh(gi[:, 2 * H:] + r * gh[:, 2 * H:])
            h = (1.0 - z) * n + z * h
            outs.append(h)
        seq = jnp.concatenate(outs, axis=0)
    return seq[-1:, :] @ params["fc_w"] + params["fc_b"]


if __name__ == "__main__":
    input_dim, hidden_dim, num_layers, seq_len = 8, 32, 2, 8

    key = jax.random.PRNGKey(0)
    pkey, xkey = jax.random.split(key)
    params = init_params(pkey, input_dim, hidden_dim, num_layers)
    x = jax.random.normal(xkey, (seq_len, input_dim), jnp.float32)

    out = discriminator_forward(x, params, hidden_dim=hidden_dim,
                                num_layers=num_layers)
    out = jax.block_until_ready(out)

    ref = reference_forward(x, params, hidden_dim=hidden_dim,
                            num_layers=num_layers)
    assert out.shape == (1, 1)
    assert jnp.allclose(out, ref, atol=1e-4, rtol=1e-4), (out, ref)
    print("KERNEL_OK")
</pallas_src>

<mosaic_0001>
module attributes {stable_mosaic.version = 11 : i64} {
  func.func @_gru_disc_kernel(%arg0: memref<8x8xf32, #tpu.memory_space<vmem>>, %arg1: memref<40x96xf32, #tpu.memory_space<vmem>>, %arg2: memref<2x96xf32, #tpu.memory_space<vmem>>, %arg3: memref<64x96xf32, #tpu.memory_space<vmem>>, %arg4: memref<2x96xf32, #tpu.memory_space<vmem>>, %arg5: memref<1x33xf32, #tpu.memory_space<vmem>>, %arg6: memref<1x1xf32, #tpu.memory_space<vmem>>) attributes {dimension_semantics = [], scalar_prefetch = 0 : i64, scratch_operands = 0 : i64, tpu.core_type = #tpu.core_type<tc>} {
    %c0 = arith.constant 0 : index
    %c0_0 = arith.constant 0 : index
    %0 = vector.load %arg1[%c0, %c0_0] : memref<40x96xf32, #tpu.memory_space<vmem>>, vector<8x96xf32>
    %c8 = arith.constant 8 : index
    %c0_1 = arith.constant 0 : index
    %1 = vector.load %arg1[%c8, %c0_1] : memref<40x96xf32, #tpu.memory_space<vmem>>, vector<32x96xf32>
    %c0_2 = arith.constant 0 : index
    %c0_3 = arith.constant 0 : index
    %2 = vector.load %arg2[%c0_2, %c0_3] : memref<2x96xf32, #tpu.memory_space<vmem>>, vector<1x96xf32>
    %c1 = arith.constant 1 : index
    %c0_4 = arith.constant 0 : index
    %3 = vector.load %arg2[%c1, %c0_4] : memref<2x96xf32, #tpu.memory_space<vmem>>, vector<1x96xf32>
    %c0_5 = arith.constant 0 : index
    %c0_6 = arith.constant 0 : index
    %4 = vector.load %arg0[%c0_5, %c0_6] : memref<8x8xf32, #tpu.memory_space<vmem>>, vector<8x8xf32>
    %cst = arith.constant dense<0.000000e+00> : vector<8x96xf32>
    %5 = tpu.matmul %4, %0, %cst {dimension_numbers = #tpu.dot_dimension_numbers<[1], [0], [0], [1], [0, 0, 1, 1], [], []>} : vector<8x8xf32>, vector<8x96xf32>, vector<8x96xf32> -> vector<8x96xf32>
    %6 = vector.broadcast %2 : vector<1x96xf32> to vector<8x96xf32>
    %7 = arith.addf %5, %6 : vector<8x96xf32>
    %cst_7 = arith.constant 0.000000e+00 : f32
    %8 = vector.broadcast %cst_7 : f32 to vector<1x32xf32>
    %9 = vector.extract_strided_slice %7 {offsets = [0, 0], sizes = [1, 96], strides = [1, 1]} : vector<8x96xf32> to vector<1x96xf32>
    %cst_8 = arith.constant dense<0.000000e+00> : vector<1x96xf32>
    %10 = tpu.matmul %8, %1, %cst_8 {dimension_numbers = #tpu.dot_dimension_numbers<[1], [0], [0], [1], [0, 0, 1, 1], [], []>} : vector<1x32xf32>, vector<32x96xf32>, vector<1x96xf32> -> vector<1x96xf32>
    %11 = arith.addf %10, %3 : vector<1x96xf32>
    %12 = vector.extract_strided_slice %9 {offsets = [0, 0], sizes = [1, 64], strides = [1, 1]} : vector<1x96xf32> to vector<1x64xf32>
    %13 = vector.extract_strided_slice %11 {offsets = [0, 0], sizes = [1, 64], strides = [1, 1]} : vector<1x96xf32> to vector<1x64xf32>
    %14 = arith.addf %12, %13 : vector<1x64xf32>
    %15 = arith.negf %14 : vector<1x64xf32>
    %16 = math.exp %15 : vector<1x64xf32>
    %cst_9 = arith.constant 1.000000e+00 : f32
    %17 = vector.broadcast %cst_9 : f32 to vector<1x64xf32>
    %18 = arith.addf %17, %16 : vector<1x64xf32>
    %19 = arith.divf %17, %18 : vector<1x64xf32>
    %20 = vector.extract_strided_slice %19 {offsets = [0, 0], sizes = [1, 32], strides = [1, 1]} : vector<1x64xf32> to vector<1x32xf32>
    %21 = vector.extract_strided_slice %19 {offsets = [0, 32], sizes = [1, 32], strides = [1, 1]} : vector<1x64xf32> to vector<1x32xf32>
    %22 = vector.extract_strided_slice %9 {offsets = [0, 64], sizes = [1, 32], strides = [1, 1]} : vector<1x96xf32> to vector<1x32xf32>
    %23 = vector.extract_strided_slice %11 {offsets = [0, 64], sizes = [1, 32], strides = [1, 1]} : vector<1x96xf32> to vector<1x32xf32>
    %24 = arith.mulf %20, %23 : vector<1x32xf32>
    %25 = arith.addf %22, %24 : vector<1x32xf32>
    %26 = math.tanh %25 : vector<1x32xf32>
    %27 = arith.subf %8, %26 : vector<1x32xf32>
    %28 = arith.mulf %21, %27 : vector<1x32xf32>
    %29 = arith.addf %26, %28 : vector<1x32xf32>
    %30 = vector.extract_strided_slice %7 {offsets = [1, 0], sizes = [1, 96], strides = [1, 1]} : vector<8x96xf32> to vector<1x96xf32>
    %cst_10 = arith.constant dense<0.000000e+00> : vector<1x96xf32>
    %31 = tpu.matmul %29, %1, %cst_10 {dimension_numbers = #tpu.dot_dimension_numbers<[1], [0], [0], [1], [0, 0, 1, 1], [], []>} : vector<1x32xf32>, vector<32x96xf32>, vector<1x96xf32> -> vector<1x96xf32>
    %32 = arith.addf %31, %3 : vector<1x96xf32>
    %33 = vector.extract_strided_slice %30 {offsets = [0, 0], sizes = [1, 64], strides = [1, 1]} : vector<1x96xf32> to vector<1x64xf32>
    %34 = vector.extract_strided_slice %32 {offsets = [0, 0], sizes = [1, 64], strides = [1, 1]} : vector<1x96xf32> to vector<1x64xf32>
    %35 = arith.addf %33, %34 : vector<1x64xf32>
    %36 = arith.negf %35 : vector<1x64xf32>
    %37 = math.exp %36 : vector<1x64xf32>
    %cst_11 = arith.constant 1.000000e+00 : f32
    %38 = vector.broadcast %cst_11 : f32 to vector<1x64xf32>
    %39 = arith.addf %38, %37 : vector<1x64xf32>
    %40 = arith.divf %38, %39 : vector<1x64xf32>
    %41 = vector.extract_strided_slice %40 {offsets = [0, 0], sizes = [1, 32], strides = [1, 1]} : vector<1x64xf32> to vector<1x32xf32>
    %42 = vector.extract_strided_slice %40 {offsets = [0, 32], sizes = [1, 32], strides = [1, 1]} : vector<1x64xf32> to vector<1x32xf32>
    %43 = vector.extract_strided_slice %30 {offsets = [0, 64], sizes = [1, 32], strides = [1, 1]} : vector<1x96xf32> to vector<1x32xf32>
    %44 = vector.extract_strided_slice %32 {offsets = [0, 64], sizes = [1, 32], strides = [1, 1]} : vector<1x96xf32> to vector<1x32xf32>
    %45 = arith.mulf %41, %44 : vector<1x32xf32>
    %46 = arith.addf %43, %45 : vector<1x32xf32>
    %47 = math.tanh %46 : vector<1x32xf32>
    %48 = arith.subf %29, %47 : vector<1x32xf32>
    %49 = arith.mulf %42, %48 : vector<1x32xf32>
    %50 = arith.addf %47, %49 : vector<1x32xf32>
    %51 = vector.extract_strided_slice %7 {offsets = [2, 0], sizes = [1, 96], strides = [1, 1]} : vector<8x96xf32> to vector<1x96xf32>
    %cst_12 = arith.constant dense<0.000000e+00> : vector<1x96xf32>
    %52 = tpu.matmul %50, %1, %cst_12 {dimension_numbers = #tpu.dot_dimension_numbers<[1], [0], [0], [1], [0, 0, 1, 1], [], []>} : vector<1x32xf32>, vector<32x96xf32>, vector<1x96xf32> -> vector<1x96xf32>
    %53 = arith.addf %52, %3 : vector<1x96xf32>
    %54 = vector.extract_strided_slice %51 {offsets = [0, 0], sizes = [1, 64], strides = [1, 1]} : vector<1x96xf32> to vector<1x64xf32>
    %55 = vector.extract_strided_slice %53 {offsets = [0, 0], sizes = [1, 64], strides = [1, 1]} : vector<1x96xf32> to vector<1x64xf32>
    %56 = arith.addf %54, %55 : vector<1x64xf32>
    %57 = arith.negf %56 : vector<1x64xf32>
    %58 = math.exp %57 : vector<1x64xf32>
    %cst_13 = arith.constant 1.000000e+00 : f32
    %59 = vector.broadcast %cst_13 : f32 to vector<1x64xf32>
    %60 = arith.addf %59, %58 : vector<1x64xf32>
    %61 = arith.divf %59, %60 : vector<1x64xf32>
    %62 = vector.extract_strided_slice %61 {offsets = [0, 0], sizes = [1, 32], strides = [1, 1]} : vector<1x64xf32> to vector<1x32xf32>
    %63 = vector.extract_strided_slice %61 {offsets = [0, 32], sizes = [1, 32], strides = [1, 1]} : vector<1x64xf32> to vector<1x32xf32>
    %64 = vector.extract_strided_slice %51 {offsets = [0, 64], sizes = [1, 32], strides = [1, 1]} : vector<1x96xf32> to vector<1x32xf32>
    %65 = vector.extract_strided_slice %53 {offsets = [0, 64], sizes = [1, 32], strides = [1, 1]} : vector<1x96xf32> to vector<1x32xf32>
    %66 = arith.mulf %62, %65 : vector<1x32xf32>
    %67 = arith.addf %64, %66 : vector<1x32xf32>
    %68 = math.tanh %67 : vector<1x32xf32>
    %69 = arith.subf %50, %68 : vector<1x32xf32>
    %70 = arith.mulf %63, %69 : vector<1x32xf32>
    %71 = arith.addf %68, %70 : vector<1x32xf32>
    %72 = vector.extract_strided_slice %7 {offsets = [3, 0], sizes = [1, 96], strides = [1, 1]} : vector<8x96xf32> to vector<1x96xf32>
    %cst_14 = arith.constant dense<0.000000e+00> : vector<1x96xf32>
    %73 = tpu.matmul %71, %1, %cst_14 {dimension_numbers = #tpu.dot_dimension_numbers<[1], [0], [0], [1], [0, 0, 1, 1], [], []>} : vector<1x32xf32>, vector<32x96xf32>, vector<1x96xf32> -> vector<1x96xf32>
    %74 = arith.addf %73, %3 : vector<1x96xf32>
    %75 = vector.extract_strided_slice %72 {offsets = [0, 0], sizes = [1, 64], strides = [1, 1]} : vector<1x96xf32> to vector<1x64xf32>
    %76 = vector.extract_strided_slice %74 {offsets = [0, 0], sizes = [1, 64], strides = [1, 1]} : vector<1x96xf32> to vector<1x64xf32>
    %77 = arith.addf %75, %76 : vector<1x64xf32>
    %78 = arith.negf %77 : vector<1x64xf32>
    %79 = math.exp %78 : vector<1x64xf32>
    %cst_15 = arith.constant 1.000000e+00 : f32
    %80 = vector.broadcast %cst_15 : f32 to vector<1x64xf32>
    %81 = arith.addf %80, %79 : vector<1x64xf32>
    %82 = arith.divf %80, %81 : vector<1x64xf32>
    %83 = vector.extract_strided_slice %82 {offsets = [0, 0], sizes = [1, 32], strides = [1, 1]} : vector<1x64xf32> to vector<1x32xf32>
    %84 = vector.extract_strided_slice %82 {offsets = [0, 32], sizes = [1, 32], strides = [1, 1]} : vector<1x64xf32> to vector<1x32xf32>
    %85 = vector.extract_strided_slice %72 {offsets = [0, 64], sizes = [1, 32], strides = [1, 1]} : vector<1x96xf32> to vector<1x32xf32>
    %86 = vector.extract_strided_slice %74 {offsets = [0, 64], sizes = [1, 32], strides = [1, 1]} : vector<1x96xf32> to vector<1x32xf32>
    %87 = arith.mulf %83, %86 : vector<1x32xf32>
    %88 = arith.addf %85, %87 : vector<1x32xf32>
    %89 = math.tanh %88 : vector<1x32xf32>
    %90 = arith.subf %71, %89 : vector<1x32xf32>
    %91 = arith.mulf %84, %90 : vector<1x32xf32>
    %92 = arith.addf %89, %91 : vector<1x32xf32>
    %93 = vector.extract_strided_slice %7 {offsets = [4, 0], sizes = [1, 96], strides = [1, 1]} : vector<8x96xf32> to vector<1x96xf32>
    %cst_16 = arith.constant dense<0.000000e+00> : vector<1x96xf32>
    %94 = tpu.matmul %92, %1, %cst_16 {dimension_numbers = #tpu.dot_dimension_numbers<[1], [0], [0], [1], [0, 0, 1, 1], [], []>} : vector<1x32xf32>, vector<32x96xf32>, vector<1x96xf32> -> vector<1x96xf32>
    %95 = arith.addf %94, %3 : vector<1x96xf32>
    %96 = vector.extract_strided_slice %93 {offsets = [0, 0], sizes = [1, 64], strides = [1, 1]} : vector<1x96xf32> to vector<1x64xf32>
    %97 = vector.extract_strided_slice %95 {offsets = [0, 0], sizes = [1, 64], strides = [1, 1]} : vector<1x96xf32> to vector<1x64xf32>
    %98 = arith.addf %96, %97 : vector<1x64xf32>
    %99 = arith.negf %98 : vector<1x64xf32>
    %100 = math.exp %99 : vector<1x64xf32>
    %cst_17 = arith.constant 1.000000e+00 : f32
    %101 = vector.broadcast %cst_17 : f32 to vector<1x64xf32>
    %102 = arith.addf %101, %100 : vector<1x64xf32>
    %103 = arith.divf %101, %102 : vector<1x64xf32>
    %104 = vector.extract_strided_slice %103 {offsets = [0, 0], sizes = [1, 32], strides = [1, 1]} : vector<1x64xf32> to vector<1x32xf32>
    %105 = vector.extract_strided_slice %103 {offsets = [0, 32], sizes = [1, 32], strides = [1, 1]} : vector<1x64xf32> to vector<1x32xf32>
    %106 = vector.extract_strided_slice %93 {offsets = [0, 64], sizes = [1, 32], strides = [1, 1]} : vector<1x96xf32> to vector<1x32xf32>
    %107 = vector.extract_strided_slice %95 {offsets = [0, 64], sizes = [1, 32], strides = [1, 1]} : vector<1x96xf32> to vector<1x32xf32>
    %108 = arith.mulf %104, %107 : vector<1x32xf32>
    %109 = arith.addf %106, %108 : vector<1x32xf32>
    %110 = math.tanh %109 : vector<1x32xf32>
    %111 = arith.subf %92, %110 : vector<1x32xf32>
    %112 = arith.mulf %105, %111 : vector<1x32xf32>
    %113 = arith.addf %110, %112 : vector<1x32xf32>
    %114 = vector.extract_strided_slice %7 {offsets = [5, 0], sizes = [1, 96], strides = [1, 1]} : vector<8x96xf32> to vector<1x96xf32>
    %cst_18 = arith.constant dense<0.000000e+00> : vector<1x96xf32>
    %115 = tpu.matmul %113, %1, %cst_18 {dimension_numbers = #tpu.dot_dimension_numbers<[1], [0], [0], [1], [0, 0, 1, 1], [], []>} : vector<1x32xf32>, vector<32x96xf32>, vector<1x96xf32> -> vector<1x96xf32>
    %116 = arith.addf %115, %3 : vector<1x96xf32>
    %117 = vector.extract_strided_slice %114 {offsets = [0, 0], sizes = [1, 64], strides = [1, 1]} : vector<1x96xf32> to vector<1x64xf32>
    %118 = vector.extract_strided_slice %116 {offsets = [0, 0], sizes = [1, 64], strides = [1, 1]} : vector<1x96xf32> to vector<1x64xf32>
    %119 = arith.addf %117, %118 : vector<1x64xf32>
    %120 = arith.negf %119 : vector<1x64xf32>
    %121 = math.exp %120 : vector<1x64xf32>
    %cst_19 = arith.constant 1.000000e+00 : f32
    %122 = vector.broadcast %cst_19 : f32 to vector<1x64xf32>
    %123 = arith.addf %122, %121 : vector<1x64xf32>
    %124 = arith.divf %122, %123 : vector<1x64xf32>
    %125 = vector.extract_strided_slice %124 {offsets = [0, 0], sizes = [1, 32], strides = [1, 1]} : vector<1x64xf32> to vector<1x32xf32>
    %126 = vector.extract_strided_slice %124 {offsets = [0, 32], sizes = [1, 32], strides = [1, 1]} : vector<1x64xf32> to vector<1x32xf32>
    %127 = vector.extract_strided_slice %114 {offsets = [0, 64], sizes = [1, 32], strides = [1, 1]} : vector<1x96xf32> to vector<1x32xf32>
    %128 = vector.extract_strided_slice %116 {offsets = [0, 64], sizes = [1, 32], strides = [1, 1]} : vector<1x96xf32> to vector<1x32xf32>
    %129 = arith.mulf %125, %128 : vector<1x32xf32>
    %130 = arith.addf %127, %129 : vector<1x32xf32>
    %131 = math.tanh %130 : vector<1x32xf32>
    %132 = arith.subf %113, %131 : vector<1x32xf32>
    %133 = arith.mulf %126, %132 : vector<1x32xf32>
    %134 = arith.addf %131, %133 : vector<1x32xf32>
    %135 = vector.extract_strided_slice %7 {offsets = [6, 0], sizes = [1, 96], strides = [1, 1]} : vector<8x96xf32> to vector<1x96xf32>
    %cst_20 = arith.constant dense<0.000000e+00> : vector<1x96xf32>
    %136 = tpu.matmul %134, %1, %cst_20 {dimension_numbers = #tpu.dot_dimension_numbers<[1], [0], [0], [1], [0, 0, 1, 1], [], []>} : vector<1x32xf32>, vector<32x96xf32>, vector<1x96xf32> -> vector<1x96xf32>
    %137 = arith.addf %136, %3 : vector<1x96xf32>
    %138 = vector.extract_strided_slice %135 {offsets = [0, 0], sizes = [1, 64], strides = [1, 1]} : vector<1x96xf32> to vector<1x64xf32>
    %139 = vector.extract_strided_slice %137 {offsets = [0, 0], sizes = [1, 64], strides = [1, 1]} : vector<1x96xf32> to vector<1x64xf32>
    %140 = arith.addf %138, %139 : vector<1x64xf32>
    %141 = arith.negf %140 : vector<1x64xf32>
    %142 = math.exp %141 : vector<1x64xf32>
    %cst_21 = arith.constant 1.000000e+00 : f32
    %143 = vector.broadcast %cst_21 : f32 to vector<1x64xf32>
    %144 = arith.addf %143, %142 : vector<1x64xf32>
    %145 = arith.divf %143, %144 : vector<1x64xf32>
    %146 = vector.extract_strided_slice %145 {offsets = [0, 0], sizes = [1, 32], strides = [1, 1]} : vector<1x64xf32> to vector<1x32xf32>
    %147 = vector.extract_strided_slice %145 {offsets = [0, 32], sizes = [1, 32], strides = [1, 1]} : vector<1x64xf32> to vector<1x32xf32>
    %148 = vector.extract_strided_slice %135 {offsets = [0, 64], sizes = [1, 32], strides = [1, 1]} : vector<1x96xf32> to vector<1x32xf32>
    %149 = vector.extract_strided_slice %137 {offsets = [0, 64], sizes = [1, 32], strides = [1, 1]} : vector<1x96xf32> to vector<1x32xf32>
    %150 = arith.mulf %146, %149 : vector<1x32xf32>
    %151 = arith.addf %148, %150 : vector<1x32xf32>
    %152 = math.tanh %151 : vector<1x32xf32>
    %153 = arith.subf %134, %152 : vector<1x32xf32>
    %154 = arith.mulf %147, %153 : vector<1x32xf32>
    %155 = arith.addf %152, %154 : vector<1x32xf32>
    %156 = vector.extract_strided_slice %7 {offsets = [7, 0], sizes = [1, 96], strides = [1, 1]} : vector<8x96xf32> to vector<1x96xf32>
    %cst_22 = arith.constant dense<0.000000e+00> : vector<1x96xf32>
    %157 = tpu.matmul %155, %1, %cst_22 {dimension_numbers = #tpu.dot_dimension_numbers<[1], [0], [0], [1], [0, 0, 1, 1], [], []>} : vector<1x32xf32>, vector<32x96xf32>, vector<1x96xf32> -> vector<1x96xf32>
    %158 = arith.addf %157, %3 : vector<1x96xf32>
    %159 = vector.extract_strided_slice %156 {offsets = [0, 0], sizes = [1, 64], strides = [1, 1]} : vector<1x96xf32> to vector<1x64xf32>
    %160 = vector.extract_strided_slice %158 {offsets = [0, 0], sizes = [1, 64], strides = [1, 1]} : vector<1x96xf32> to vector<1x64xf32>
    %161 = arith.addf %159, %160 : vector<1x64xf32>
    %162 = arith.negf %161 : vector<1x64xf32>
    %163 = math.exp %162 : vector<1x64xf32>
    %cst_23 = arith.constant 1.000000e+00 : f32
    %164 = vector.broadcast %cst_23 : f32 to vector<1x64xf32>
    %165 = arith.addf %164, %163 : vector<1x64xf32>
    %166 = arith.divf %164, %165 : vector<1x64xf32>
    %167 = vector.extract_strided_slice %166 {offsets = [0, 0], sizes = [1, 32], strides = [1, 1]} : vector<1x64xf32> to vector<1x32xf32>
    %168 = vector.extract_strided_slice %166 {offsets = [0, 32], sizes = [1, 32], strides = [1, 1]} : vector<1x64xf32> to vector<1x32xf32>
    %169 = vector.extract_strided_slice %156 {offsets = [0, 64], sizes = [1, 32], strides = [1, 1]} : vector<1x96xf32> to vector<1x32xf32>
    %170 = vector.extract_strided_slice %158 {offsets = [0, 64], sizes = [1, 32], strides = [1, 1]} : vector<1x96xf32> to vector<1x32xf32>
    %171 = arith.mulf %167, %170 : vector<1x32xf32>
    %172 = arith.addf %169, %171 : vector<1x32xf32>
    %173 = math.tanh %172 : vector<1x32xf32>
    %174 = arith.subf %155, %173 : vector<1x32xf32>
    %175 = arith.mulf %168, %174 : vector<1x32xf32>
    %176 = arith.addf %173, %175 : vector<1x32xf32>
    %c0_24 = arith.constant 0 : index
    %c0_25 = arith.constant 0 : index
    %177 = vector.load %arg3[%c0_24, %c0_25] : memref<64x96xf32, #tpu.memory_space<vmem>>, vector<32x96xf32>
    %c32 = arith.constant 32 : index
    %c0_26 = arith.constant 0 : index
    %178 = vector.load %arg3[%c32, %c0_26] : memref<64x96xf32, #tpu.memory_space<vmem>>, vector<32x96xf32>
    %c0_27 = arith.constant 0 : index
    %c0_28 = arith.constant 0 : index
    %179 = vector.load %arg4[%c0_27, %c0_28] : memref<2x96xf32, #tpu.memory_space<vmem>>, vector<1x96xf32>
    %c1_29 = arith.constant 1 : index
    %c0_30 = arith.constant 0 : index
    %180 = vector.load %arg4[%c1_29, %c0_30] : memref<2x96xf32, #tpu.memory_space<vmem>>, vector<1x96xf32>
    %cst_31 = arith.constant 0.000000e+00 : f32
    %181 = vector.broadcast %cst_31 : f32 to vector<1x32xf32>
    %cst_32 = arith.constant dense<0.000000e+00> : vector<1x96xf32>
    %182 = tpu.matmul %29, %177, %cst_32 {dimension_numbers = #tpu.dot_dimension_numbers<[1], [0], [0], [1], [0, 0, 1, 1], [], []>} : vector<1x32xf32>, vector<32x96xf32>, vector<1x96xf32> -> vector<1x96xf32>
    %183 = arith.addf %182, %179 : vector<1x96xf32>
    %cst_33 = arith.constant dense<0.000000e+00> : vector<1x96xf32>
    %184 = tpu.matmul %181, %178, %cst_33 {dimension_numbers = #tpu.dot_dimension_numbers<[1], [0], [0], [1], [0, 0, 1, 1], [], []>} : vector<1x32xf32>, vector<32x96xf32>, vector<1x96xf32> -> vector<1x96xf32>
    %185 = arith.addf %184, %180 : vector<1x96xf32>
    %186 = vector.extract_strided_slice %183 {offsets = [0, 0], sizes = [1, 64], strides = [1, 1]} : vector<1x96xf32> to vector<1x64xf32>
    %187 = vector.extract_strided_slice %185 {offsets = [0, 0], sizes = [1, 64], strides = [1, 1]} : vector<1x96xf32> to vector<1x64xf32>
    %188 = arith.addf %186, %187 : vector<1x64xf32>
    %189 = arith.negf %188 : vector<1x64xf32>
    %190 = math.exp %189 : vector<1x64xf32>
    %cst_34 = arith.constant 1.000000e+00 : f32
    %191 = vector.broadcast %cst_34 : f32 to vector<1x64xf32>
    %192 = arith.addf %191, %190 : vector<1x64xf32>
    %193 = arith.divf %191, %192 : vector<1x64xf32>
    %194 = vector.extract_strided_slice %193 {offsets = [0, 0], sizes = [1, 32], strides = [1, 1]} : vector<1x64xf32> to vector<1x32xf32>
    %195 = vector.extract_strided_slice %193 {offsets = [0, 32], sizes = [1, 32], strides = [1, 1]} : vector<1x64xf32> to vector<1x32xf32>
    %196 = vector.extract_strided_slice %183 {offsets = [0, 64], sizes = [1, 32], strides = [1, 1]} : vector<1x96xf32> to vector<1x32xf32>
    %197 = vector.extract_strided_slice %185 {offsets = [0, 64], sizes = [1, 32], strides = [1, 1]} : vector<1x96xf32> to vector<1x32xf32>
    %198 = arith.mulf %194, %197 : vector<1x32xf32>
    %199 = arith.addf %196, %198 : vector<1x32xf32>
    %200 = math.tanh %199 : vector<1x32xf32>
    %201 = arith.subf %181, %200 : vector<1x32xf32>
    %202 = arith.mulf %195, %201 : vector<1x32xf32>
    %203 = arith.addf %200, %202 : vector<1x32xf32>
    %cst_35 = arith.constant dense<0.000000e+00> : vector<1x96xf32>
    %204 = tpu.matmul %50, %177, %cst_35 {dimension_numbers = #tpu.dot_dimension_numbers<[1], [0], [0], [1], [0, 0, 1, 1], [], []>} : vector<1x32xf32>, vector<32x96xf32>, vector<1x96xf32> -> vector<1x96xf32>
    %205 = arith.addf %204, %179 : vector<1x96xf32>
    %cst_36 = arith.constant dense<0.000000e+00> : vector<1x96xf32>
    %206 = tpu.matmul %203, %178, %cst_36 {dimension_numbers = #tpu.dot_dimension_numbers<[1], [0], [0], [1], [0, 0, 1, 1], [], []>} : vector<1x32xf32>, vector<32x96xf32>, vector<1x96xf32> -> vector<1x96xf32>
    %207 = arith.addf %206, %180 : vector<1x96xf32>
    %208 = vector.extract_strided_slice %205 {offsets = [0, 0], sizes = [1, 64], strides = [1, 1]} : vector<1x96xf32> to vector<1x64xf32>
    %209 = vector.extract_strided_slice %207 {offsets = [0, 0], sizes = [1, 64], strides = [1, 1]} : vector<1x96xf32> to vector<1x64xf32>
    %210 = arith.addf %208, %209 : vector<1x64xf32>
    %211 = arith.negf %210 : vector<1x64xf32>
    %212 = math.exp %211 : vector<1x64xf32>
    %cst_37 = arith.constant 1.000000e+00 : f32
    %213 = vector.broadcast %cst_37 : f32 to vector<1x64xf32>
    %214 = arith.addf %213, %212 : vector<1x64xf32>
    %215 = arith.divf %213, %214 : vector<1x64xf32>
    %216 = vector.extract_strided_slice %215 {offsets = [0, 0], sizes = [1, 32], strides = [1, 1]} : vector<1x64xf32> to vector<1x32xf32>
    %217 = vector.extract_strided_slice %215 {offsets = [0, 32], sizes = [1, 32], strides = [1, 1]} : vector<1x64xf32> to vector<1x32xf32>
    %218 = vector.extract_strided_slice %205 {offsets = [0, 64], sizes = [1, 32], strides = [1, 1]} : vector<1x96xf32> to vector<1x32xf32>
    %219 = vector.extract_strided_slice %207 {offsets = [0, 64], sizes = [1, 32], strides = [1, 1]} : vector<1x96xf32> to vector<1x32xf32>
    %220 = arith.mulf %216, %219 : vector<1x32xf32>
    %221 = arith.addf %218, %220 : vector<1x32xf32>
    %222 = math.tanh %221 : vector<1x32xf32>
    %223 = arith.subf %203, %222 : vector<1x32xf32>
    %224 = arith.mulf %217, %223 : vector<1x32xf32>
    %225 = arith.addf %222, %224 : vector<1x32xf32>
    %cst_38 = arith.constant dense<0.000000e+00> : vector<1x96xf32>
    %226 = tpu.matmul %71, %177, %cst_38 {dimension_numbers = #tpu.dot_dimension_numbers<[1], [0], [0], [1], [0, 0, 1, 1], [], []>} : vector<1x32xf32>, vector<32x96xf32>, vector<1x96xf32> -> vector<1x96xf32>
    %227 = arith.addf %226, %179 : vector<1x96xf32>
    %cst_39 = arith.constant dense<0.000000e+00> : vector<1x96xf32>
    %228 = tpu.matmul %225, %178, %cst_39 {dimension_numbers = #tpu.dot_dimension_numbers<[1], [0], [0], [1], [0, 0, 1, 1], [], []>} : vector<1x32xf32>, vector<32x96xf32>, vector<1x96xf32> -> vector<1x96xf32>
    %229 = arith.addf %228, %180 : vector<1x96xf32>
    %230 = vector.extract_strided_slice %227 {offsets = [0, 0], sizes = [1, 64], strides = [1, 1]} : vector<1x96xf32> to vector<1x64xf32>
    %231 = vector.extract_strided_slice %229 {offsets = [0, 0], sizes = [1, 64], strides = [1, 1]} : vector<1x96xf32> to vector<1x64xf32>
    %232 = arith.addf %230, %231 : vector<1x64xf32>
    %233 = arith.negf %232 : vector<1x64xf32>
    %234 = math.exp %233 : vector<1x64xf32>
    %cst_40 = arith.constant 1.000000e+00 : f32
    %235 = vector.broadcast %cst_40 : f32 to vector<1x64xf32>
    %236 = arith.addf %235, %234 : vector<1x64xf32>
    %237 = arith.divf %235, %236 : vector<1x64xf32>
    %238 = vector.extract_strided_slice %237 {offsets = [0, 0], sizes = [1, 32], strides = [1, 1]} : vector<1x64xf32> to vector<1x32xf32>
    %239 = vector.extract_strided_slice %237 {offsets = [0, 32], sizes = [1, 32], strides = [1, 1]} : vector<1x64xf32> to vector<1x32xf32>
    %240 = vector.extract_strided_slice %227 {offsets = [0, 64], sizes = [1, 32], strides = [1, 1]} : vector<1x96xf32> to vector<1x32xf32>
    %241 = vector.extract_strided_slice %229 {offsets = [0, 64], sizes = [1, 32], strides = [1, 1]} : vector<1x96xf32> to vector<1x32xf32>
    %242 = arith.mulf %238, %241 : vector<1x32xf32>
    %243 = arith.addf %240, %242 : vector<1x32xf32>
    %244 = math.tanh %243 : vector<1x32xf32>
    %245 = arith.subf %225, %244 : vector<1x32xf32>
    %246 = arith.mulf %239, %245 : vector<1x32xf32>
    %247 = arith.addf %244, %246 : vector<1x32xf32>
    %cst_41 = arith.constant dense<0.000000e+00> : vector<1x96xf32>
    %248 = tpu.matmul %92, %177, %cst_41 {dimension_numbers = #tpu.dot_dimension_numbers<[1], [0], [0], [1], [0, 0, 1, 1], [], []>} : vector<1x32xf32>, vector<32x96xf32>, vector<1x96xf32> -> vector<1x96xf32>
    %249 = arith.addf %248, %179 : vector<1x96xf32>
    %cst_42 = arith.constant dense<0.000000e+00> : vector<1x96xf32>
    %250 = tpu.matmul %247, %178, %cst_42 {dimension_numbers = #tpu.dot_dimension_numbers<[1], [0], [0], [1], [0, 0, 1, 1], [], []>} : vector<1x32xf32>, vector<32x96xf32>, vector<1x96xf32> -> vector<1x96xf32>
    %251 = arith.addf %250, %180 : vector<1x96xf32>
    %252 = vector.extract_strided_slice %249 {offsets = [0, 0], sizes = [1, 64], strides = [1, 1]} : vector<1x96xf32> to vector<1x64xf32>
    %253 = vector.extract_strided_slice %251 {offsets = [0, 0], sizes = [1, 64], strides = [1, 1]} : vector<1x96xf32> to vector<1x64xf32>
    %254 = arith.addf %252, %253 : vector<1x64xf32>
    %255 = arith.negf %254 : vector<1x64xf32>
    %256 = math.exp %255 : vector<1x64xf32>
    %cst_43 = arith.constant 1.000000e+00 : f32
    %257 = vector.broadcast %cst_43 : f32 to vector<1x64xf32>
    %258 = arith.addf %257, %256 : vector<1x64xf32>
    %259 = arith.divf %257, %258 : vector<1x64xf32>
    %260 = vector.extract_strided_slice %259 {offsets = [0, 0], sizes = [1, 32], strides = [1, 1]} : vector<1x64xf32> to vector<1x32xf32>
    %261 = vector.extract_strided_slice %259 {offsets = [0, 32], sizes = [1, 32], strides = [1, 1]} : vector<1x64xf32> to vector<1x32xf32>
    %262 = vector.extract_strided_slice %249 {offsets = [0, 64], sizes = [1, 32], strides = [1, 1]} : vector<1x96xf32> to vector<1x32xf32>
    %263 = vector.extract_strided_slice %251 {offsets = [0, 64], sizes = [1, 32], strides = [1, 1]} : vector<1x96xf32> to vector<1x32xf32>
    %264 = arith.mulf %260, %263 : vector<1x32xf32>
    %265 = arith.addf %262, %264 : vector<1x32xf32>
    %266 = math.tanh %265 : vector<1x32xf32>
    %267 = arith.subf %247, %266 : vector<1x32xf32>
    %268 = arith.mulf %261, %267 : vector<1x32xf32>
    %269 = arith.addf %266, %268 : vector<1x32xf32>
    %cst_44 = arith.constant dense<0.000000e+00> : vector<1x96xf32>
    %270 = tpu.matmul %113, %177, %cst_44 {dimension_numbers = #tpu.dot_dimension_numbers<[1], [0], [0], [1], [0, 0, 1, 1], [], []>} : vector<1x32xf32>, vector<32x96xf32>, vector<1x96xf32> -> vector<1x96xf32>
    %271 = arith.addf %270, %179 : vector<1x96xf32>
    %cst_45 = arith.constant dense<0.000000e+00> : vector<1x96xf32>
    %272 = tpu.matmul %269, %178, %cst_45 {dimension_numbers = #tpu.dot_dimension_numbers<[1], [0], [0], [1], [0, 0, 1, 1], [], []>} : vector<1x32xf32>, vector<32x96xf32>, vector<1x96xf32> -> vector<1x96xf32>
    %273 = arith.addf %272, %180 : vector<1x96xf32>
    %274 = vector.extract_strided_slice %271 {offsets = [0, 0], sizes = [1, 64], strides = [1, 1]} : vector<1x96xf32> to vector<1x64xf32>
    %275 = vector.extract_strided_slice %273 {offsets = [0, 0], sizes = [1, 64], strides = [1, 1]} : vector<1x96xf32> to vector<1x64xf32>
    %276 = arith.addf %274, %275 : vector<1x64xf32>
    %277 = arith.negf %276 : vector<1x64xf32>
    %278 = math.exp %277 : vector<1x64xf32>
    %cst_46 = arith.constant 1.000000e+00 : f32
    %279 = vector.broadcast %cst_46 : f32 to vector<1x64xf32>
    %280 = arith.addf %279, %278 : vector<1x64xf32>
    %281 = arith.divf %279, %280 : vector<1x64xf32>
    %282 = vector.extract_strided_slice %281 {offsets = [0, 0], sizes = [1, 32], strides = [1, 1]} : vector<1x64xf32> to vector<1x32xf32>
    %283 = vector.extract_strided_slice %281 {offsets = [0, 32], sizes = [1, 32], strides = [1, 1]} : vector<1x64xf32> to vector<1x32xf32>
    %284 = vector.extract_strided_slice %271 {offsets = [0, 64], sizes = [1, 32], strides = [1, 1]} : vector<1x96xf32> to vector<1x32xf32>
    %285 = vector.extract_strided_slice %273 {offsets = [0, 64], sizes = [1, 32], strides = [1, 1]} : vector<1x96xf32> to vector<1x32xf32>
    %286 = arith.mulf %282, %285 : vector<1x32xf32>
    %287 = arith.addf %284, %286 : vector<1x32xf32>
    %288 = math.tanh %287 : vector<1x32xf32>
    %289 = arith.subf %269, %288 : vector<1x32xf32>
    %290 = arith.mulf %283, %289 : vector<1x32xf32>
    %291 = arith.addf %288, %290 : vector<1x32xf32>
    %cst_47 = arith.constant dense<0.000000e+00> : vector<1x96xf32>
    %292 = tpu.matmul %134, %177, %cst_47 {dimension_numbers = #tpu.dot_dimension_numbers<[1], [0], [0], [1], [0, 0, 1, 1], [], []>} : vector<1x32xf32>, vector<32x96xf32>, vector<1x96xf32> -> vector<1x96xf32>
    %293 = arith.addf %292, %179 : vector<1x96xf32>
    %cst_48 = arith.constant dense<0.000000e+00> : vector<1x96xf32>
    %294 = tpu.matmul %291, %178, %cst_48 {dimension_numbers = #tpu.dot_dimension_numbers<[1], [0], [0], [1], [0, 0, 1, 1], [], []>} : vector<1x32xf32>, vector<32x96xf32>, vector<1x96xf32> -> vector<1x96xf32>
    %295 = arith.addf %294, %180 : vector<1x96xf32>
    %296 = vector.extract_strided_slice %293 {offsets = [0, 0], sizes = [1, 64], strides = [1, 1]} : vector<1x96xf32> to vector<1x64xf32>
    %297 = vector.extract_strided_slice %295 {offsets = [0, 0], sizes = [1, 64], strides = [1, 1]} : vector<1x96xf32> to vector<1x64xf32>
    %298 = arith.addf %296, %297 : vector<1x64xf32>
    %299 = arith.negf %298 : vector<1x64xf32>
    %300 = math.exp %299 : vector<1x64xf32>
    %cst_49 = arith.constant 1.000000e+00 : f32
    %301 = vector.broadcast %cst_49 : f32 to vector<1x64xf32>
    %302 = arith.addf %301, %300 : vector<1x64xf32>
    %303 = arith.divf %301, %302 : vector<1x64xf32>
    %304 = vector.extract_strided_slice %303 {offsets = [0, 0], sizes = [1, 32], strides = [1, 1]} : vector<1x64xf32> to vector<1x32xf32>
    %305 = vector.extract_strided_slice %303 {offsets = [0, 32], sizes = [1, 32], strides = [1, 1]} : vector<1x64xf32> to vector<1x32xf32>
    %306 = vector.extract_strided_slice %293 {offsets = [0, 64], sizes = [1, 32], strides = [1, 1]} : vector<1x96xf32> to vector<1x32xf32>
    %307 = vector.extract_strided_slice %295 {offsets = [0, 64], sizes = [1, 32], strides = [1, 1]} : vector<1x96xf32> to vector<1x32xf32>
    %308 = arith.mulf %304, %307 : vector<1x32xf32>
    %309 = arith.addf %306, %308 : vector<1x32xf32>
    %310 = math.tanh %309 : vector<1x32xf32>
    %311 = arith.subf %291, %310 : vector<1x32xf32>
    %312 = arith.mulf %305, %311 : vector<1x32xf32>
    %313 = arith.addf %310, %312 : vector<1x32xf32>
    %cst_50 = arith.constant dense<0.000000e+00> : vector<1x96xf32>
    %314 = tpu.matmul %155, %177, %cst_50 {dimension_numbers = #tpu.dot_dimension_numbers<[1], [0], [0], [1], [0, 0, 1, 1], [], []>} : vector<1x32xf32>, vector<32x96xf32>, vector<1x96xf32> -> vector<1x96xf32>
    %315 = arith.addf %314, %179 : vector<1x96xf32>
    %cst_51 = arith.constant dense<0.000000e+00> : vector<1x96xf32>
    %316 = tpu.matmul %313, %178, %cst_51 {dimension_numbers = #tpu.dot_dimension_numbers<[1], [0], [0], [1], [0, 0, 1, 1], [], []>} : vector<1x32xf32>, vector<32x96xf32>, vector<1x96xf32> -> vector<1x96xf32>
    %317 = arith.addf %316, %180 : vector<1x96xf32>
    %318 = vector.extract_strided_slice %315 {offsets = [0, 0], sizes = [1, 64], strides = [1, 1]} : vector<1x96xf32> to vector<1x64xf32>
    %319 = vector.extract_strided_slice %317 {offsets = [0, 0], sizes = [1, 64], strides = [1, 1]} : vector<1x96xf32> to vector<1x64xf32>
    %320 = arith.addf %318, %319 : vector<1x64xf32>
    %321 = arith.negf %320 : vector<1x64xf32>
    %322 = math.exp %321 : vector<1x64xf32>
    %cst_52 = arith.constant 1.000000e+00 : f32
    %323 = vector.broadcast %cst_52 : f32 to vector<1x64xf32>
    %324 = arith.addf %323, %322 : vector<1x64xf32>
    %325 = arith.divf %323, %324 : vector<1x64xf32>
    %326 = vector.extract_strided_slice %325 {offsets = [0, 0], sizes = [1, 32], strides = [1, 1]} : vector<1x64xf32> to vector<1x32xf32>
    %327 = vector.extract_strided_slice %325 {offsets = [0, 32], sizes = [1, 32], strides = [1, 1]} : vector<1x64xf32> to vector<1x32xf32>
    %328 = vector.extract_strided_slice %315 {offsets = [0, 64], sizes = [1, 32], strides = [1, 1]} : vector<1x96xf32> to vector<1x32xf32>
    %329 = vector.extract_strided_slice %317 {offsets = [0, 64], sizes = [1, 32], strides = [1, 1]} : vector<1x96xf32> to vector<1x32xf32>
    %330 = arith.mulf %326, %329 : vector<1x32xf32>
    %331 = arith.addf %328, %330 : vector<1x32xf32>
    %332 = math.tanh %331 : vector<1x32xf32>
    %333 = arith.subf %313, %332 : vector<1x32xf32>
    %334 = arith.mulf %327, %333 : vector<1x32xf32>
    %335 = arith.addf %332, %334 : vector<1x32xf32>
    %cst_53 = arith.constant dense<0.000000e+00> : vector<1x96xf32>
    %336 = tpu.matmul %176, %177, %cst_53 {dimension_numbers = #tpu.dot_dimension_numbers<[1], [0], [0], [1], [0, 0, 1, 1], [], []>} : vector<1x32xf32>, vector<32x96xf32>, vector<1x96xf32> -> vector<1x96xf32>
    %337 = arith.addf %336, %179 : vector<1x96xf32>
    %cst_54 = arith.constant dense<0.000000e+00> : vector<1x96xf32>
    %338 = tpu.matmul %335, %178, %cst_54 {dimension_numbers = #tpu.dot_dimension_numbers<[1], [0], [0], [1], [0, 0, 1, 1], [], []>} : vector<1x32xf32>, vector<32x96xf32>, vector<1x96xf32> -> vector<1x96xf32>
    %339 = arith.addf %338, %180 : vector<1x96xf32>
    %340 = vector.extract_strided_slice %337 {offsets = [0, 0], sizes = [1, 64], strides = [1, 1]} : vector<1x96xf32> to vector<1x64xf32>
    %341 = vector.extract_strided_slice %339 {offsets = [0, 0], sizes = [1, 64], strides = [1, 1]} : vector<1x96xf32> to vector<1x64xf32>
    %342 = arith.addf %340, %341 : vector<1x64xf32>
    %343 = arith.negf %342 : vector<1x64xf32>
    %344 = math.exp %343 : vector<1x64xf32>
    %cst_55 = arith.constant 1.000000e+00 : f32
    %345 = vector.broadcast %cst_55 : f32 to vector<1x64xf32>
    %346 = arith.addf %345, %344 : vector<1x64xf32>
    %347 = arith.divf %345, %346 : vector<1x64xf32>
    %348 = vector.extract_strided_slice %347 {offsets = [0, 0], sizes = [1, 32], strides = [1, 1]} : vector<1x64xf32> to vector<1x32xf32>
    %349 = vector.extract_strided_slice %347 {offsets = [0, 32], sizes = [1, 32], strides = [1, 1]} : vector<1x64xf32> to vector<1x32xf32>
    %350 = vector.extract_strided_slice %337 {offsets = [0, 64], sizes = [1, 32], strides = [1, 1]} : vector<1x96xf32> to vector<1x32xf32>
    %351 = vector.extract_strided_slice %339 {offsets = [0, 64], sizes = [1, 32], strides = [1, 1]} : vector<1x96xf32> to vector<1x32xf32>
    %352 = arith.mulf %348, %351 : vector<1x32xf32>
    %353 = arith.addf %350, %352 : vector<1x32xf32>
    %354 = math.tanh %353 : vector<1x32xf32>
    %355 = arith.subf %335, %354 : vector<1x32xf32>
    %356 = arith.mulf %349, %355 : vector<1x32xf32>
    %357 = arith.addf %354, %356 : vector<1x32xf32>
    %c0_56 = arith.constant 0 : index
    %c0_57 = arith.constant 0 : index
    %358 = vector.load %arg5[%c0_56, %c0_57] : memref<1x33xf32, #tpu.memory_space<vmem>>, vector<1x33xf32>
    %359 = vector.extract_strided_slice %358 {offsets = [0, 0], sizes = [1, 32], strides = [1, 1]} : vector<1x33xf32> to vector<1x32xf32>
    %360 = arith.mulf %357, %359 : vector<1x32xf32>
    %cst_58 = arith.constant dense<0.000000e+00> : vector<1xf32>
    %361 = vector.multi_reduction <add>, %360, %cst_58 [1] : vector<1x32xf32> to vector<1xf32>
    %362 = vector.shape_cast %361 : vector<1xf32> to vector<1x1xf32>
    %363 = vector.extract_strided_slice %358 {offsets = [0, 32], sizes = [1, 1], strides = [1, 1]} : vector<1x33xf32> to vector<1x1xf32>
    %364 = arith.addf %362, %363 : vector<1x1xf32>
    %c0_59 = arith.constant 0 : index
    %c0_60 = arith.constant 0 : index
    %365 = vector.load %arg6[%c0_59, %c0_60] : memref<1x1xf32, #tpu.memory_space<vmem>>, vector<1x1xf32>
    tpu.vector_store %arg6[%c0_59, %c0_60], %364 {strides = array<i32>} : memref<1x1xf32, #tpu.memory_space<vmem>>, vector<1x1xf32>,
    return
  }
}

</mosaic_0001>

<bundles_post_ra>
// kernel: tpu_custom_call.1
= control target key start
LH: loop header
LB: loop body
LE: loop exit
PB: predicated region body
PF: predicated region fallthrough
CT: control target
= control target key end

     0   :  { %11 = vsyncpa [#allocation3], 0  ;;  %s2057_s0 = inlined_call_operand.hbm [shape: f32[8,8], index: 0, kind: input, shape index: {}]   ;;  %s2058_s1 = inlined_call_operand.hbm [shape: f32[40,96], index: 1, kind: input, shape index: {}]   ;;  %s2059_s2 = inlined_call_operand.hbm [shape: f32[2,96], index: 2, kind: input, shape index: {}]   ;;  %s2060_s3 = inlined_call_operand.hbm [shape: f32[64,96], index: 3, kind: input, shape index: {}]   ;;  %s2061_s4 = inlined_call_operand.vmem [shape: f32[2,96], index: 4, kind: input, shape index: {}]   ;;  %s2062_s5 = inlined_call_operand.vmem [shape: f32[1,33], index: 5, kind: input, shape index: {}]   ;;  %s2063_s6 = inlined_call_operand.hbm [shape: f32[1,1], index: 6, kind: output, shape index: {}]  }
   0x1   :  { %12 = vsyncpa [#allocation6], 0 }
   0x2   :  { %13 = vsyncpa [#allocation9], 0  ;;  %s30_s23 = sshll.u32 %s2058_s1, 4  ;;  %s31_s23 = int_to_ptr.hbm [resolvable:$true] %s30_s23 }
   0x3   :  { %14 = vsyncpa [#allocation4], 0  ;;  %s1723_s24 = smov [#allocation5]   ;;  %s20_s28 = sshll.u32 %s2057_s0, 4  ;;  %s21_s28 = int_to_ptr.hbm [resolvable:$true] %s20_s28 }
   0x4   :  { %s32_s25 = sshll.u32 %s1723_s24, 4  ;;  %s1724_s29 = smov 128   ;;  %s33_s25 = int_to_ptr.vmem [resolvable:$true] %s32_s25 }
   0x5   :  { %s1725_s30 = smov 8   ;;  %s1726_s7 = smov [#allocation2]  }
   0x6   :  { %38 = dma.hbm_to_vmem [thread:$0]  %s31_s23, 640, %s33_s25, [#allocation6], %s1724_s29, %s1724_s29, %s1725_s30  }
   0x7   :  { %s22_s8 = sshll.u32 %s1726_s7, 4  ;;  %s44_s11 = sshll.u32 %s2059_s2, 4  ;;  %s23_s8 = int_to_ptr.vmem [resolvable:$true] %s22_s8  ;;  %s45_s11 = int_to_ptr.hbm [resolvable:$true] %s44_s11 }
   0x8   :  { %25 = dma.hbm_to_vmem [thread:$0]  %s21_s28, 128, %s23_s8, [#allocation3]  }
   0x9   :  { %s54_s13 = sshll.u32 %s2060_s3, 4  ;;  %s1727_s14 = smov [#allocation7]   ;;  %s55_s13 = int_to_ptr.hbm [resolvable:$true] %s54_s13 }
   0xa   :  { %s46_s15 = sshll.u32 %s1727_s14, 4  ;;  %s1728_s0 = smov [#allocation8]   ;;  %s47_s15 = int_to_ptr.vmem [resolvable:$true] %s46_s15 }
   0xb   :  { %49 = dma.hbm_to_vmem [thread:$0]  %s45_s11, 32, %s47_s15, [#allocation6]  }
   0xc   :  { %s56_s16 = sshll.u32 %s1728_s0, 4  ;;  %s57_s16 = int_to_ptr.vmem [resolvable:$true] %s56_s16 }
   0xd   :  { %62 = dma.hbm_to_vmem [thread:$0]  %s55_s13, 1024, %s57_s16, [#allocation9], %s1724_s29, %s1724_s29, %s1725_s30  }
   0xe   :  { %1715 = dma.done.wait [#allocation3], 128  }
   0xf   :  { %1716 = vsyncadd [#allocation3], 4294967168 }
  0x10   :  { %1717 = dma.done.wait [#allocation6], 672  }
  0x11   :  { %1718 = vsyncadd [#allocation6], 4294966624 }
  0x12   :  { %1719 = dma.done.wait [#allocation9], 1024  }
  0x13   :  { %1720 = vsyncadd [#allocation9], 4294966272  ;;  %v87_v0 = vld [vmem:[#allocation5 + $0x20] sm:$0xff]  ;;  %v86_v1 = vld [vmem:[#allocation5 + $0x18] sm:$0xff]  ;;  %vm92_vm0 = vcmask 64512   ;;  %v1729_v6 = vmov 0.0  }
  0x14   :  { %132 = vmatpush.msra.mxu1 %v87_v0  ;;  %v83_v2 = vld [vmem:[#allocation5] sm:$0xff]  ;;  %v90_v3 = vld [vmem:[#allocation2] sm:$0xff]  ;;  %199 = vmatpush.msra.mxu2 %v87_v0  ;;  %v85_v4 = vld [vmem:[#allocation5 + $0x10] sm:$0xff]  ;;  %s1730_s2 = smov 64   ;;  %s1731_s3 = smov 96   ;;  %vm116_vm5 = vcmask 261120  }
  0x15   :  { %111 = vmatpush.msra.mxu0 %v83_v2  ;;  %273 = vmatpush.msra.mxu3 %v87_v0  ;;  %v84_v5 = vld [vmem:[#allocation5 + $0x8] sm:$0xff]  ;;  %s1732_s17 = smov 32   ;;  %s1434_s26 = sshll.u32 %s2063_s6, 4  ;;  %s1435_s26 = int_to_ptr.hbm [resolvable:$true] %s1434_s26 }
  0x16   :  { %133 = vmatpush.msra.mxu1 %v86_v1  ;;  %1446 = vmatmul.msk.f32.vlgmr.msra.gmra.mxu0 %vm92_vm0, %v90_v3  ;;  %v1782_v7 = vld [vmem:[#allocation7 + $0x1] sm:$0x1]  ;;  %v1496_v10 = vld [vmem:[#allocation7] ss:$0 sm:$0xff] }
  0x17   :  { %200 = vmatpush.msra.mxu2 %v86_v1  ;;  %274 = vmatpush.msra.mxu3 %v86_v1 }
  0x18   :  { %134 = vmatpush.msra.mxu1 %v85_v4  ;;  %347 = vmatpush.msrb.mxu0 %v87_v0 }
  0x19   :  { %201 = vmatpush.msra.mxu2 %v85_v4  ;;  %275 = vmatpush.msra.mxu3 %v85_v4 }
  0x1a   :  { %135 = vmatpush.msra.mxu1 %v84_v5  ;;  %348 = vmatpush.msrb.mxu0 %v86_v1 }
  0x1b   :  { %136 = vmatmul.f32.vlgmr.msra.gmra.mxu1 %v1729_v6  ;;  %202 = vmatpush.msra.mxu2 %v84_v5 }
  0x1c   :  { %276 = vmatpush.msra.mxu3 %v84_v5  ;;  %349 = vmatpush.msrb.mxu0 %v85_v4 }
  0x1d   :  { %421 = vmatpush.msrb.mxu1 %v87_v0  ;;  %495 = vmatpush.msrb.mxu2 %v87_v0 }
  0x1e   :  { %350 = vmatpush.msrb.mxu0 %v84_v5  ;;  %569 = vmatpush.msrb.mxu3 %v87_v0 }
  0x1f   :  { %422 = vmatpush.msrb.mxu1 %v86_v1  ;;  %496 = vmatpush.msrb.mxu2 %v86_v1 }
  0x20   :  { %570 = vmatpush.msrb.mxu3 %v86_v1  ;;  %643 = vmatpush.msra.mxu0 %v87_v0 }
  0x21   :  { %423 = vmatpush.msrb.mxu1 %v85_v4  ;;  %497 = vmatpush.msrb.mxu2 %v85_v4 }
  0x22   :  { %571 = vmatpush.msrb.mxu3 %v85_v4  ;;  %644 = vmatpush.msra.mxu0 %v86_v1 }
  0x23   :  { %424 = vmatpush.msrb.mxu1 %v84_v5  ;;  %498 = vmatpush.msrb.mxu2 %v84_v5 }
  0x24   :  { %572 = vmatpush.msrb.mxu3 %v84_v5  ;;  %645 = vmatpush.msra.mxu0 %v85_v4 }
  0x26   :  { %646 = vmatpush.msra.mxu0 %v84_v5 }
  0x93   :  { %v113_v11 = vpop.f32.mrf.mxu0 }
  0x94   :  { %v1786_v12 = vadd.f32 %v1496_v10, %v113_v11 }
  0x98   :  { %v137_v8 = vpop.f32.mrf.mxu1 }
  0x99   :  { %v138_v9 = vadd.f32 %v137_v8, %v1782_v7 }
  0x9b   :  { %161 = vrot.lane.b32.xlu0 %v138_v9, %s1730_s2  ;;  %v140_v13 = vadd.f32 %v138_v9, %v1786_v12 }
  0x9d   :  { %v1447_v14 = vmul.f32 -1.442695, %v140_v13 }
  0x9f   :  { %1498 = vpow2.f32 %v1447_v14 }
  0xa5   :  { %v1499_v15 = vpop.eup %1498 }
  0xa6   :  { %v144_v16 = vadd.f32 1.0, %v1499_v15 }
  0xa8   :  { %1500 = vrcp.f32 %v144_v16  ;;  %v156_v22 = vand.u32 2147483648, %v144_v16  ;;  %vm150_vm2 = vweird.f32 %v144_v16  ;;  %v154_v23 = vand.u32 2147483647, %v144_v16 }
  0xaa   :  { %v157_v25 = vor.u32 1.1754944e-38, %v156_v22  ;;  %vm155_vm4 = vcmp.eq.f32.partialorder %v154_v23, 8.507059e+37 }
  0xae   :  { %v1501_v17 = vpop.eup %1500 }
  0xaf   :  { %v146_v18 = vmul.f32 %v1501_v17, %v144_v16  ;;  %vm151_vm1 = vweird.f32 %v1501_v17 }
  0xb0   :  { %vm152_vm3 = vmor %vm150_vm2, %vm151_vm1 }
  0xb1   :  { %v147_v19 = vsub.f32 1.0, %v146_v18 }
  0xb3   :  { %v148_v20 = vmul.f32 %v1501_v17, %v147_v19 }
  0xb5   :  { %v149_v21 = vadd.f32 %v1501_v17, %v148_v20 }
  0xb7   :  { %v153_v24 = vsel %vm152_vm3, %v1501_v17, %v149_v21 }
  0xb8   :  { %v158_v27 = vsel %vm155_vm4, %v157_v25, %v153_v24 }
 0x10d   :  { %v162_v26 = vpop.permute.xlu0 %161 }
 0x10e   :  { %v164_v28 = vmul.f32 %v162_v26, %v158_v27 }
 0x110   :  { %166 = vrot.lane.b32.xlu0 %v164_v28, %s1730_s2 }
 0x182   :  { %v167_v29 = vpop.permute.xlu0 %166 }
 0x183   :  { %v169_v30 = vadd.f32 %v167_v29, %v1786_v12 }
 0x185   :  { %1502 = vtanh.f32 %v169_v30 }
 0x18b   :  { %v1503_v31 = vpop.eup %1502 }
 0x18c   :  { %v171_v32 = vsub.f32 0.0, %v1503_v31 }
 0x18e   :  { %173 = vrot.lane.b32.xlu1 %v171_v32, %s1731_s3 }
 0x200   :  { %v174_v33 = vpop.permute.xlu1 %173 }
 0x201   :  { %v176_v34 = vmul.f32 %v174_v33, %v158_v27 }
 0x203   :  { %178 = vrot.lane.b32.xlu1 %v176_v34, %s1732_s17 }
 0x275   :  { %v179_v35 = vpop.permute.xlu1 %178 }
 0x276   :  { %v181_v36 = vadd.f32 %v1503_v31, %v179_v35 }
 0x278   :  { %183 = vrot.lane.b32.xlu2 %v181_v36, %s1730_s2 }
 0x2d2   :  { %v1794_v37 = vpop.permute.xlu2 %183 }
 0x2d3   :  { %1448 = vmatmul.msk.f32.vlgmr.msra.gmra.mxu2 %vm116_vm5, %v1794_v37 }
 0x356   :  { %v204_v38 = vpop.f32.mrf.mxu2 }
 0x357   :  { %v205_v39 = vadd.f32 %v204_v38, %v1782_v7 }
 0x359   :  { %v208_v40 = vrot.slane %v205_v39, 7 }
 0x35b   :  { %230 = vrot.lane.b32.xlu2 %v208_v40, %s1730_s2  ;;  %v210_v41 = vadd.f32 %v208_v40, %v1786_v12 }
 0x35d   :  { %v1449_v42 = vmul.f32 -1.442695, %v210_v41 }
 0x35f   :  { %1504 = vpow2.f32 %v1449_v42 }
 0x365   :  { %v1505_v43 = vpop.eup %1504 }
 0x366   :  { %v214_v44 = vadd.f32 1.0, %v1505_v43 }
 0x368   :  { %1506 = vrcp.f32 %v214_v44  ;;  %v226_v50 = vand.u32 2147483648, %v214_v44  ;;  %vm220_vm7 = vweird.f32 %v214_v44  ;;  %v224_v51 = vand.u32 2147483647, %v214_v44 }
 0x36a   :  { %v227_v53 = vor.u32 1.1754944e-38, %v226_v50  ;;  %vm225_vm9 = vcmp.eq.f32.partialorder %v224_v51, 8.507059e+37 }
 0x36e   :  { %v1507_v45 = vpop.eup %1506 }
 0x36f   :  { %v216_v46 = vmul.f32 %v1507_v45, %v214_v44  ;;  %vm221_vm6 = vweird.f32 %v1507_v45 }
 0x370   :  { %vm222_vm8 = vmor %vm220_vm7, %vm221_vm6 }
 0x371   :  { %v217_v47 = vsub.f32 1.0, %v216_v46 }
 0x373   :  { %v218_v48 = vmul.f32 %v1507_v45, %v217_v47 }
 0x375   :  { %v219_v49 = vadd.f32 %v1507_v45, %v218_v48 }
 0x377   :  { %v223_v52 = vsel %vm222_vm8, %v1507_v45, %v219_v49 }
 0x378   :  { %v228_v55 = vsel %vm225_vm9, %v227_v53, %v223_v52 }
 0x3b5   :  { %v231_v54 = vpop.permute.xlu2 %230 }
 0x3b6   :  { %v233_v56 = vmul.f32 %v231_v54, %v228_v55 }
 0x3b8   :  { %235 = vrot.lane.b32.xlu0 %v233_v56, %s1730_s2 }
 0x42a   :  { %v236_v57 = vpop.permute.xlu0 %235 }
 0x42b   :  { %v238_v58 = vadd.f32 %v236_v57, %v1786_v12 }
 0x42d   :  { %1508 = vtanh.f32 %v238_v58 }
 0x433   :  { %v1509_v59 = vpop.eup %1508 }
 0x434   :  { %v241_v60 = vrot.slane %v1509_v59, 1 }
 0x436   :  { %v243_v61 = vsub.f32 %v181_v36, %v241_v60 }
 0x438   :  { %v245_v62 = vrot.slane %v243_v61, 7 }
 0x43a   :  { %246 = vrot.lane.b32.xlu1 %v245_v62, %s1731_s3 }
 0x4ac   :  { %v247_v63 = vpop.permute.xlu1 %246 }
 0x4ad   :  { %v249_v0 = vmul.f32 %v247_v63, %v228_v55 }
 0x4af   :  { %251 = vrot.lane.b32.xlu2 %v249_v0, %s1732_s17 }
 0x509   :  { %v252_v1 = vpop.permute.xlu2 %251 }
 0x50a   :  { %v254_v2 = vadd.f32 %v1509_v59, %v252_v1 }
 0x50c   :  { %v256_v3 = vrot.slane %v254_v2, 1 }
 0x50e   :  { %257 = vrot.lane.b32.xlu0 %v256_v3, %s1730_s2 }
 0x580   :  { %v1806_v4 = vpop.permute.xlu0 %257 }
 0x581   :  { %1450 = vmatmul.msk.f32.vlgmr.msra.gmra.mxu3 %vm116_vm5, %v1806_v4 }
 0x604   :  { %v278_v5 = vpop.f32.mrf.mxu3 }
 0x605   :  { %v279_v8 = vadd.f32 %v278_v5, %v1782_v7 }
 0x607   :  { %v282_v9 = vrot.slane %v279_v8, 6 }
 0x609   :  { %304 = vrot.lane.b32.xlu1 %v282_v9, %s1730_s2  ;;  %v284_v10 = vadd.f32 %v282_v9, %v1786_v12  ;;  %v1833_v9 = vld [vmem:[#allocation8 + $0x18] sm:$0xff] }
 0x60a   :  { %721 = vmatpush.msra.mxu1 %v1833_v9  ;;  %803 = vmatpush.msra.mxu3 %v1833_v9 }
 0x60b   :  { %v1451_v11 = vmul.f32 -1.442695, %v284_v10  ;;  %v1835_v10 = vld [vmem:[#allocation8 + $0x10] sm:$0xff] }
 0x60c   :  { %722 = vmatpush.msra.mxu1 %v1835_v10  ;;  %804 = vmatpush.msra.mxu3 %v1835_v10 }
 0x60d   :  { %1510 = vpow2.f32 %v1451_v11  ;;  %v1839_v11 = vld [vmem:[#allocation8 + $0x8] sm:$0xff] }
 0x60e   :  { %723 = vmatpush.msra.mxu1 %v1839_v11  ;;  %805 = vmatpush.msra.mxu3 %v1839_v11 }
 0x613   :  { %v1511_v13 = vpop.eup %1510 }
 0x614   :  { %v288_v14 = vadd.f32 1.0, %v1511_v13  ;;  %v1843_v13 = vld [vmem:[#allocation8] sm:$0xff] }
 0x615   :  { %724 = vmatpush.msra.mxu1 %v1843_v13  ;;  %806 = vmatpush.msra.mxu3 %v1843_v13 }
 0x616   :  { %1512 = vrcp.f32 %v288_v14  ;;  %v300_v20 = vand.u32 2147483648, %v288_v14  ;;  %vm294_vm11 = vweird.f32 %v288_v14  ;;  %v298_v21 = vand.u32 2147483647, %v288_v14 }
 0x618   :  { %v301_v23 = vor.u32 1.1754944e-38, %v300_v20  ;;  %vm299_vm13 = vcmp.eq.f32.partialorder %v298_v21, 8.507059e+37 }
 0x61c   :  { %v1513_v15 = vpop.eup %1512 }
 0x61d   :  { %v290_v16 = vmul.f32 %v1513_v15, %v288_v14  ;;  %vm295_vm10 = vweird.f32 %v1513_v15 }
 0x61e   :  { %vm296_vm12 = vmor %vm294_vm11, %vm295_vm10 }
 0x61f   :  { %v291_v17 = vsub.f32 1.0, %v290_v16 }
 0x621   :  { %v292_v18 = vmul.f32 %v1513_v15, %v291_v17 }
 0x623   :  { %v293_v19 = vadd.f32 %v1513_v15, %v292_v18 }
 0x625   :  { %v297_v22 = vsel %vm296_vm12, %v1513_v15, %v293_v19 }
 0x626   :  { %v302_v25 = vsel %vm299_vm13, %v301_v23, %v297_v22 }
 0x67b   :  { %v305_v24 = vpop.permute.xlu1 %304 }
 0x67c   :  { %v307_v26 = vmul.f32 %v305_v24, %v302_v25 }
 0x67e   :  { %309 = vrot.lane.b32.xlu2 %v307_v26, %s1730_s2 }
 0x6d8   :  { %v310_v27 = vpop.permute.xlu2 %309 }
 0x6d9   :  { %v312_v28 = vadd.f32 %v310_v27, %v1786_v12 }
 0x6db   :  { %1514 = vtanh.f32 %v312_v28 }
 0x6e1   :  { %v1515_v29 = vpop.eup %1514 }
 0x6e2   :  { %v315_v30 = vrot.slane %v1515_v29, 1 }
 0x6e4   :  { %v317_v31 = vsub.f32 %v254_v2, %v315_v30 }
 0x6e6   :  { %v319_v32 = vrot.slane %v317_v31, 7 }
 0x6e8   :  { %320 = vrot.lane.b32.xlu0 %v319_v32, %s1731_s3 }
 0x75a   :  { %v321_v33 = vpop.permute.xlu0 %320 }
 0x75b   :  { %v323_v34 = vmul.f32 %v321_v33, %v302_v25 }
 0x75d   :  { %325 = vrot.lane.b32.xlu1 %v323_v34, %s1732_s17 }
 0x7cf   :  { %v326_v35 = vpop.permute.xlu1 %325 }
 0x7d0   :  { %v328_v36 = vadd.f32 %v1515_v29, %v326_v35 }
 0x7d2   :  { %v330_v38 = vrot.slane %v328_v36, 2 }
 0x7d4   :  { %331 = vrot.lane.b32.xlu2 %v330_v38, %s1730_s2 }
 0x82e   :  { %v1818_v39 = vpop.permute.xlu2 %331 }
 0x82f   :  { %1452 = vmatmul.msk.f32.vlgmr.msrb.gmra.mxu0 %vm116_vm5, %v1818_v39 }
 0x8ac   :  { %v352_v40 = vpop.f32.mrf.mxu0 }
 0x8ad   :  { %v353_v41 = vadd.f32 %v352_v40, %v1782_v7 }
 0x8af   :  { %v356_v42 = vrot.slane %v353_v41, 5 }
 0x8b1   :  { %378 = vrot.lane.b32.xlu0 %v356_v42, %s1730_s2  ;;  %v358_v43 = vadd.f32 %v356_v42, %v1786_v12 }
 0x8b3   :  { %v1453_v44 = vmul.f32 -1.442695, %v358_v43 }
 0x8b5   :  { %1516 = vpow2.f32 %v1453_v44 }
 0x8bb   :  { %v1517_v45 = vpop.eup %1516 }
 0x8bc   :  { %v362_v46 = vadd.f32 1.0, %v1517_v45  ;;  %v1878_v45 = vld [vmem:[#allocation8 + $0x38] sm:$0xff] }
 0x8bd   :  { %741 = vmatpush.msra.mxu2 %v1878_v45  ;;  %828 = vmatpush.msrb.mxu0 %v1878_v45 }
 0x8be   :  { %1518 = vrcp.f32 %v362_v46  ;;  %v374_v52 = vand.u32 2147483648, %v362_v46  ;;  %vm368_vm15 = vweird.f32 %v362_v46  ;;  %v372_v53 = vand.u32 2147483647, %v362_v46 }
 0x8c0   :  { %v375_v55 = vor.u32 1.1754944e-38, %v374_v52  ;;  %vm373_vm1 = vcmp.eq.f32.partialorder %v372_v53, 8.507059e+37 }
 0x8c4   :  { %v1519_v47 = vpop.eup %1518 }
 0x8c5   :  { %v364_v48 = vmul.f32 %v1519_v47, %v362_v46  ;;  %vm369_vm14 = vweird.f32 %v1519_v47  ;;  %v1880_v46 = vld [vmem:[#allocation8 + $0x30] sm:$0xff] }
 0x8c6   :  { %vm370_vm0 = vmor %vm368_vm15, %vm369_vm14  ;;  %742 = vmatpush.msra.mxu2 %v1880_v46  ;;  %829 = vmatpush.msrb.mxu0 %v1880_v46 }
 0x8c7   :  { %v365_v49 = vsub.f32 1.0, %v364_v48  ;;  %v1888_v48 = vld [vmem:[#allocation8 + $0x20] sm:$0xff] }
 0x8c9   :  { %v366_v50 = vmul.f32 %v1519_v47, %v365_v49 }
 0x8cb   :  { %v367_v51 = vadd.f32 %v1519_v47, %v366_v50 }
 0x8cd   :  { %v371_v54 = vsel %vm370_vm0, %v1519_v47, %v367_v51  ;;  %v1884_v47 = vld [vmem:[#allocation8 + $0x28] sm:$0xff] }
 0x8ce   :  { %v376_v57 = vsel %vm373_vm1, %v375_v55, %v371_v54  ;;  %743 = vmatpush.msra.mxu2 %v1884_v47  ;;  %830 = vmatpush.msrb.mxu0 %v1884_v47 }
 0x8d0   :  { %744 = vmatpush.msra.mxu2 %v1888_v48  ;;  %831 = vmatpush.msrb.mxu0 %v1888_v48 }
 0x923   :  { %v379_v56 = vpop.permute.xlu0 %378 }
 0x924   :  { %v381_v58 = vmul.f32 %v379_v56, %v376_v57 }
 0x926   :  { %383 = vrot.lane.b32.xlu1 %v381_v58, %s1730_s2 }
 0x998   :  { %v384_v59 = vpop.permute.xlu1 %383 }
 0x999   :  { %v386_v60 = vadd.f32 %v384_v59, %v1786_v12 }
 0x99b   :  { %1520 = vtanh.f32 %v386_v60 }
 0x9a1   :  { %v1521_v61 = vpop.eup %1520 }
 0x9a2   :  { %v389_v62 = vrot.slane %v1521_v61, 1 }
 0x9a4   :  { %v391_v63 = vsub.f32 %v328_v36, %v389_v62 }
 0x9a6   :  { %v393_v0 = vrot.slane %v391_v63, 7 }
 0x9a8   :  { %394 = vrot.lane.b32.xlu2 %v393_v0, %s1731_s3 }
 0xa02   :  { %v395_v1 = vpop.permute.xlu2 %394 }
 0xa03   :  { %v397_v2 = vmul.f32 %v395_v1, %v376_v57 }
 0xa05   :  { %399 = vrot.lane.b32.xlu0 %v397_v2, %s1732_s17 }
 0xa77   :  { %v400_v3 = vpop.permute.xlu0 %399 }
 0xa78   :  { %v1829_v5 = vadd.f32 %v1521_v61, %v400_v3 }
 0xa7a   :  { %v404_v8 = vrot.slane %v1829_v5, 3 }
 0xa7c   :  { %405 = vrot.lane.b32.xlu1 %v404_v8, %s1730_s2 }
 0xaee   :  { %v1849_v14 = vpop.permute.xlu1 %405 }
 0xaef   :  { %1454 = vmatmul.msk.f32.vlgmr.msrb.gmra.mxu1 %vm116_vm5, %v1849_v14 }
 0xaf0   :  { %890 = vmatpush.msrb.mxu1 %v1833_v9 }
 0xaf2   :  { %891 = vmatpush.msrb.mxu1 %v1835_v10 }
 0xaf4   :  { %892 = vmatpush.msrb.mxu1 %v1839_v11 }
 0xaf6   :  { %893 = vmatpush.msrb.mxu1 %v1843_v13 }
 0xaf7   :  { %1462 = vmatmul.msk.f32.vlgmr.msra.gmra.mxu1 %vm116_vm5, %v1794_v37 }
 0xaf8   :  { %1064 = vmatpush.msra.mxu1 %v1833_v9 }
 0xafa   :  { %1065 = vmatpush.msra.mxu1 %v1835_v10 }
 0xafc   :  { %1066 = vmatpush.msra.mxu1 %v1839_v11 }
 0xafe   :  { %1067 = vmatpush.msra.mxu1 %v1843_v13 }
 0xaff   :  { %1467 = vmatmul.msk.f32.vlgmr.msrb.gmra.mxu1 %vm116_vm5, %v1818_v39 }
 0xb00   :  { %1238 = vmatpush.msrb.mxu1 %v1833_v9 }
 0xb02   :  { %1239 = vmatpush.msrb.mxu1 %v1835_v10 }
 0xb04   :  { %1240 = vmatpush.msrb.mxu1 %v1839_v11 }
 0xb06   :  { %1241 = vmatpush.msrb.mxu1 %v1843_v13 }
 0xb6c   :  { %v426_v37 = vpop.f32.mrf.mxu1 }
 0xb6d   :  { %v427_v15 = vadd.f32 %v426_v37, %v1782_v7 }
 0xb6f   :  { %v430_v16 = vrot.slane %v427_v15, 4 }
 0xb71   :  { %452 = vrot.lane.b32.xlu2 %v430_v16, %s1730_s2  ;;  %v432_v17 = vadd.f32 %v430_v16, %v1786_v12 }
 0xb73   :  { %v1455_v18 = vmul.f32 -1.442695, %v432_v17 }
 0xb75   :  { %1522 = vpow2.f32 %v1455_v18 }
 0xb7b   :  { %v1523_v19 = vpop.eup %1522 }
 0xb7c   :  { %v436_v20 = vadd.f32 1.0, %v1523_v19 }
 0xb7e   :  { %1524 = vrcp.f32 %v436_v20  ;;  %v448_v26 = vand.u32 2147483648, %v436_v20  ;;  %vm442_vm3 = vweird.f32 %v436_v20  ;;  %v446_v27 = vand.u32 2147483647, %v436_v20 }
 0xb80   :  { %v449_v29 = vor.u32 1.1754944e-38, %v448_v26  ;;  %vm447_vm6 = vcmp.eq.f32.partialorder %v446_v27, 8.507059e+37  ;;  %v726_v27 = vpop.f32.mrf.mxu1 }
 0xb84   :  { %v1525_v21 = vpop.eup %1524 }
 0xb85   :  { %v438_v22 = vmul.f32 %v1525_v21, %v436_v20  ;;  %vm443_vm2 = vweird.f32 %v1525_v21  ;;  %v1915_v20 = vld [vmem:[%s2061_s4 + $0x1] sm:$0x1] }
 0xb86   :  { %vm444_vm4 = vmor %vm442_vm3, %vm443_vm2 }
 0xb87   :  { %v439_v23 = vsub.f32 1.0, %v438_v22 }
 0xb89   :  { %v440_v24 = vmul.f32 %v1525_v21, %v439_v23 }
 0xb8b   :  { %v441_v25 = vadd.f32 %v1525_v21, %v440_v24 }
 0xb8d   :  { %v445_v28 = vsel %vm444_vm4, %v1525_v21, %v441_v25 }
 0xb8e   :  { %v450_v31 = vsel %vm447_vm6, %v449_v29, %v445_v28 }
 0xbcb   :  { %v453_v30 = vpop.permute.xlu2 %452 }
 0xbcc   :  { %v455_v32 = vmul.f32 %v453_v30, %v450_v31 }
 0xbce   :  { %457 = vrot.lane.b32.xlu0 %v455_v32, %s1730_s2 }
 0xc40   :  { %v458_v33 = vpop.permute.xlu0 %457 }
 0xc41   :  { %v460_v34 = vadd.f32 %v458_v33, %v1786_v12 }
 0xc43   :  { %1526 = vtanh.f32 %v460_v34 }
 0xc49   :  { %v1527_v35 = vpop.eup %1526 }
 0xc4a   :  { %v463_v36 = vrot.slane %v1527_v35, 1 }
 0xc4c   :  { %v465_v38 = vsub.f32 %v1829_v5, %v463_v36 }
 0xc4e   :  { %v467_v39 = vrot.slane %v465_v38, 7 }
 0xc50   :  { %468 = vrot.lane.b32.xlu1 %v467_v39, %s1731_s3 }
 0xcc2   :  { %v469_v40 = vpop.permute.xlu1 %468 }
 0xcc3   :  { %v471_v41 = vmul.f32 %v469_v40, %v450_v31 }
 0xcc5   :  { %473 = vrot.lane.b32.xlu2 %v471_v41, %s1732_s17 }
 0xd1f   :  { %v474_v42 = vpop.permute.xlu2 %473 }
 0xd20   :  { %v476_v43 = vadd.f32 %v1527_v35, %v474_v42 }
 0xd22   :  { %v478_v44 = vrot.slane %v476_v43, 4 }
 0xd24   :  { %479 = vrot.lane.b32.xlu0 %v478_v44, %s1730_s2 }
 0xd96   :  { %v480_v49 = vpop.permute.xlu0 %479 }
 0xd97   :  { %1456 = vmatmul.msk.f32.vlgmr.msrb.gmra.mxu2 %vm116_vm5, %v480_v49  ;;  %1473 = vmatmul.msk.f32.vlgmr.msra.gmra.mxu1 %vm116_vm5, %v480_v49 }
 0xd98   :  { %915 = vmatpush.msrb.mxu2 %v1878_v45 }
 0xd9a   :  { %916 = vmatpush.msrb.mxu2 %v1880_v46 }
 0xd9c   :  { %917 = vmatpush.msrb.mxu2 %v1884_v47 }
 0xd9e   :  { %918 = vmatpush.msrb.mxu2 %v1888_v48 }
 0xd9f   :  { %745 = vmatmul.f32.vlgmr.msra.gmra.mxu2 %v1729_v6 }
 0xda0   :  { %1089 = vmatpush.msra.mxu2 %v1878_v45 }
 0xda2   :  { %1090 = vmatpush.msra.mxu2 %v1880_v46 }
 0xda4   :  { %1091 = vmatpush.msra.mxu2 %v1884_v47 }
 0xda6   :  { %1092 = vmatpush.msra.mxu2 %v1888_v48 }
 0xe1a   :  { %v500_v50 = vpop.f32.mrf.mxu2 }
 0xe1b   :  { %v501_v51 = vadd.f32 %v500_v50, %v1782_v7 }
 0xe1d   :  { %v504_v52 = vrot.slane %v501_v51, 3 }
 0xe1f   :  { %526 = vrot.lane.b32.xlu1 %v504_v52, %s1730_s2  ;;  %v506_v53 = vadd.f32 %v504_v52, %v1786_v12 }
 0xe21   :  { %v1457_v54 = vmul.f32 -1.442695, %v506_v53 }
 0xe22   :  { %v746_v21 = vpop.f32.mrf.mxu2 }
 0xe23   :  { %1528 = vpow2.f32 %v1457_v54  ;;  %v747_v22 = vadd.f32 %v746_v21, %v1915_v20 }
 0xe29   :  { %v1529_v55 = vpop.eup %1528 }
 0xe2a   :  { %v510_v6 = vadd.f32 1.0, %v1529_v55 }
 0xe2c   :  { %1530 = vrcp.f32 %v510_v6  ;;  %v522_v61 = vand.u32 2147483648, %v510_v6  ;;  %vm516_vm8 = vweird.f32 %v510_v6  ;;  %v520_v62 = vand.u32 2147483647, %v510_v6 }
 0xe2e   :  { %v523_v0 = vor.u32 1.1754944e-38, %v522_v61  ;;  %vm521_vm10 = vcmp.eq.f32.partialorder %v520_v62, 8.507059e+37 }
 0xe32   :  { %v1531_v56 = vpop.eup %1530 }
 0xe33   :  { %v512_v57 = vmul.f32 %v1531_v56, %v510_v6  ;;  %vm517_vm7 = vweird.f32 %v1531_v56 }
 0xe34   :  { %vm518_vm9 = vmor %vm516_vm8, %vm517_vm7 }
 0xe35   :  { %v513_v58 = vsub.f32 1.0, %v512_v57 }
 0xe37   :  { %v514_v59 = vmul.f32 %v1531_v56, %v513_v58 }
 0xe39   :  { %v515_v60 = vadd.f32 %v1531_v56, %v514_v59 }
 0xe3b   :  { %v519_v63 = vsel %vm518_vm9, %v1531_v56, %v515_v60 }
 0xe3c   :  { %v524_v2 = vsel %vm521_vm10, %v523_v0, %v519_v63 }
 0xe91   :  { %v527_v1 = vpop.permute.xlu1 %526 }
 0xe92   :  { %v529_v3 = vmul.f32 %v527_v1, %v524_v2 }
 0xe94   :  { %531 = vrot.lane.b32.xlu2 %v529_v3, %s1730_s2 }
 0xeee   :  { %v532_v5 = vpop.permute.xlu2 %531 }
 0xeef   :  { %v534_v8 = vadd.f32 %v532_v5, %v1786_v12 }
 0xef1   :  { %1532 = vtanh.f32 %v534_v8 }
 0xef7   :  { %v1533_v37 = vpop.eup %1532 }
 0xef8   :  { %v537_v15 = vrot.slane %v1533_v37, 1 }
 0xefa   :  { %v539_v16 = vsub.f32 %v476_v43, %v537_v15 }
 0xefc   :  { %v541_v17 = vrot.slane %v539_v16, 7 }
 0xefe   :  { %542 = vrot.lane.b32.xlu0 %v541_v17, %s1731_s3 }
 0xf70   :  { %v543_v18 = vpop.permute.xlu0 %542 }
 0xf71   :  { %v545_v19 = vmul.f32 %v543_v18, %v524_v2 }
 0xf73   :  { %547 = vrot.lane.b32.xlu1 %v545_v19, %s1732_s17 }
 0xf7b   :  { %770 = vrot.lane.b32.xlu1 %v747_v22, %s1730_s2 }
 0xfe5   :  { %v548_v23 = vpop.permute.xlu1 %547 }
 0xfe6   :  { %v1919_v24 = vadd.f32 %v1533_v37, %v548_v23 }
 0xfe8   :  { %v552_v25 = vrot.slane %v1919_v24, 5 }
 0xfea   :  { %553 = vrot.lane.b32.xlu2 %v552_v25, %s1730_s2 }
 0xfed   :  { %v771_v41 = vpop.permute.xlu1 %770 }
0x1044   :  { %v554_v26 = vpop.permute.xlu2 %553 }
0x1045   :  { %1458 = vmatmul.msk.f32.vlgmr.msrb.gmra.mxu3 %vm116_vm5, %v554_v26 }
0x1046   :  { %977 = vmatpush.msrb.mxu3 %v1833_v9 }
0x1048   :  { %978 = vmatpush.msrb.mxu3 %v1835_v10 }
0x104a   :  { %979 = vmatpush.msrb.mxu3 %v1839_v11 }
0x104c   :  { %980 = vmatpush.msrb.mxu3 %v1843_v13 }
0x104d   :  { %1464 = vmatmul.msk.f32.vlgmr.msra.gmra.mxu3 %vm116_vm5, %v1806_v4  ;;  %v1944_v4 = vld [vmem:[%s2061_s4] sm:$0x1] }
0x104e   :  { %1151 = vmatpush.msra.mxu3 %v1833_v9  ;;  %v727_v28 = vadd.f32 %v726_v27, %v1944_v4 }
0x1050   :  { %1152 = vmatpush.msra.mxu3 %v1835_v10  ;;  %v749_v29 = vadd.f32 %v747_v22, %v727_v28 }
0x1052   :  { %1153 = vmatpush.msra.mxu3 %v1839_v11 }
0x1054   :  { %1154 = vmatpush.msra.mxu3 %v1843_v13 }
0x1055   :  { %1470 = vmatmul.msk.f32.vlgmr.msrb.gmra.mxu3 %vm116_vm5, %v1849_v14  ;;  %v1463_v14 = vmul.f32 -1.442695, %v749_v29 }
0x1056   :  { %1331 = vmatpush.msrb.mxu3 %v1833_v9 }
0x1057   :  { %1534 = vpow2.f32 %v1463_v14 }
0x1058   :  { %1332 = vmatpush.msrb.mxu3 %v1835_v10 }
0x105a   :  { %1333 = vmatpush.msrb.mxu3 %v1839_v11 }
0x105c   :  { %1334 = vmatpush.msrb.mxu3 %v1843_v13 }
0x105d   :  { %1476 = vmatmul.msk.f32.vlgmr.msra.gmra.mxu3 %vm116_vm5, %v554_v26  ;;  %v1535_v9 = vpop.eup %1534 }
0x105e   :  { %v753_v30 = vadd.f32 1.0, %v1535_v9 }
0x1060   :  { %1536 = vrcp.f32 %v753_v30  ;;  %v765_v36 = vand.u32 2147483648, %v753_v30  ;;  %vm759_vm12 = vweird.f32 %v753_v30  ;;  %v763_v38 = vand.u32 2147483647, %v753_v30 }
0x1062   :  { %v766_v40 = vor.u32 1.1754944e-38, %v765_v36  ;;  %vm764_vm14 = vcmp.eq.f32.partialorder %v763_v38, 8.507059e+37 }
0x1066   :  { %v1537_v10 = vpop.eup %1536 }
0x1067   :  { %v755_v11 = vmul.f32 %v1537_v10, %v753_v30  ;;  %vm760_vm11 = vweird.f32 %v1537_v10 }
0x1068   :  { %vm761_vm13 = vmor %vm759_vm12, %vm760_vm11 }
0x1069   :  { %v756_v31 = vsub.f32 1.0, %v755_v11 }
0x106b   :  { %v757_v13 = vmul.f32 %v1537_v10, %v756_v31 }
0x106d   :  { %v758_v34 = vadd.f32 %v1537_v10, %v757_v13 }
0x106f   :  { %v762_v39 = vsel %vm761_vm13, %v1537_v10, %v758_v34 }
0x1070   :  { %v767_v42 = vsel %vm764_vm14, %v766_v40, %v762_v39 }
0x1071   :  { %v773_v43 = vmul.f32 %v771_v41, %v767_v42 }
0x10c8   :  { %v574_v32 = vpop.f32.mrf.mxu3 }
0x10c9   :  { %v575_v33 = vadd.f32 %v574_v32, %v1782_v7 }
0x10cb   :  { %v578_v35 = vrot.slane %v575_v33, 2 }
0x10cd   :  { %600 = vrot.lane.b32.xlu0 %v578_v35, %s1730_s2  ;;  %v580_v44 = vadd.f32 %v578_v35, %v1786_v12 }
0x10cf   :  { %v1459_v7 = vmul.f32 -1.442695, %v580_v44 }
0x10d0   :  { %v808_v9 = vpop.f32.mrf.mxu3 }
0x10d1   :  { %1538 = vpow2.f32 %v1459_v7  ;;  %v809_v30 = vadd.f32 %v808_v9, %v1944_v4 }
0x10d5   :  { %775 = vrot.lane.b32.xlu0 %v773_v43, %s1730_s2 }
0x10d7   :  { %v1539_v49 = vpop.eup %1538 }
0x10d8   :  { %v584_v50 = vadd.f32 1.0, %v1539_v49 }
0x10da   :  { %1540 = vrcp.f32 %v584_v50  ;;  %v596_v6 = vand.u32 2147483648, %v584_v50  ;;  %vm590_vm0 = vweird.f32 %v584_v50  ;;  %v594_v56 = vand.u32 2147483647, %v584_v50 }
0x10dc   :  { %v597_v58 = vor.u32 1.1754944e-38, %v596_v6  ;;  %vm595_vm2 = vcmp.eq.f32.partialorder %v594_v56, 8.507059e+37 }
0x10e0   :  { %v1541_v51 = vpop.eup %1540 }
0x10e1   :  { %v586_v52 = vmul.f32 %v1541_v51, %v584_v50  ;;  %vm591_vm15 = vweird.f32 %v1541_v51 }
0x10e2   :  { %vm592_vm1 = vmor %vm590_vm0, %vm591_vm15 }
0x10e3   :  { %v587_v53 = vsub.f32 1.0, %v586_v52 }
0x10e5   :  { %v588_v54 = vmul.f32 %v1541_v51, %v587_v53 }
0x10e7   :  { %v589_v55 = vadd.f32 %v1541_v51, %v588_v54 }
0x10e9   :  { %v593_v57 = vsel %vm592_vm1, %v1541_v51, %v589_v55 }
0x10ea   :  { %v598_v60 = vsel %vm595_vm2, %v597_v58, %v593_v57  ;;  %v895_v58 = vpop.f32.mrf.mxu1 }
0x113f   :  { %v601_v59 = vpop.permute.xlu0 %600 }
0x1140   :  { %v603_v61 = vmul.f32 %v601_v59, %v598_v60  ;;  %v896_v59 = vadd.f32 %v895_v58, %v1944_v4 }
0x1142   :  { %605 = vrot.lane.b32.xlu2 %v603_v61, %s1730_s2 }
0x1147   :  { %v776_v62 = vpop.permute.xlu0 %775 }
0x1148   :  { %v778_v63 = vadd.f32 %v776_v62, %v727_v28 }
0x114a   :  { %1542 = vtanh.f32 %v778_v63 }
0x1150   :  { %v1543_v0 = vpop.eup %1542 }
0x1151   :  { %v780_v1 = vsub.f32 0.0, %v1543_v0 }
0x1153   :  { %782 = vrot.lane.b32.xlu2 %v780_v1, %s1731_s3 }
0x119c   :  { %v606_v2 = vpop.permute.xlu2 %605 }
0x119d   :  { %v608_v3 = vadd.f32 %v606_v2, %v1786_v12 }
0x119f   :  { %1544 = vtanh.f32 %v608_v3 }
0x11a5   :  { %v1545_v5 = vpop.eup %1544 }
0x11a6   :  { %v611_v8 = vrot.slane %v1545_v5, 1 }
0x11a8   :  { %v613_v37 = vsub.f32 %v1919_v24, %v611_v8 }
0x11aa   :  { %v615_v15 = vrot.slane %v613_v37, 7 }
0x11ac   :  { %616 = vrot.lane.b32.xlu1 %v615_v15, %s1731_s3 }
0x11ad   :  { %v783_v16 = vpop.permute.xlu2 %782 }
0x11ae   :  { %v785_v17 = vmul.f32 %v783_v16, %v767_v42 }
0x11b4   :  { %787 = vrot.lane.b32.xlu1 %v785_v17, %s1732_s17 }
0x121e   :  { %v617_v18 = vpop.permute.xlu1 %616 }
0x121f   :  { %v619_v19 = vmul.f32 %v617_v18, %v598_v60 }
0x1221   :  { %621 = vrot.lane.b32.xlu0 %v619_v19, %s1732_s17 }
0x1226   :  { %v788_v21 = vpop.permute.xlu1 %787 }
0x1227   :  { %v790_v22 = vadd.f32 %v1543_v0, %v788_v21 }
0x1229   :  { %812 = vrot.lane.b32.xlu0 %v790_v22, %s1730_s2 }
0x1293   :  { %v622_v23 = vpop.permute.xlu0 %621 }
0x1294   :  { %v1959_v25 = vadd.f32 %v1545_v5, %v622_v23 }
0x1296   :  { %v626_v24 = vrot.slane %v1959_v25, 6 }
0x1298   :  { %627 = vrot.lane.b32.xlu2 %v626_v24, %s1730_s2 }
0x129b   :  { %v813_v27 = vpop.permute.xlu0 %812 }
0x12f2   :  { %v628_v26 = vpop.permute.xlu2 %627 }
0x12f3   :  { %1460 = vmatmul.msk.f32.vlgmr.msra.gmra.mxu0 %vm116_vm5, %v628_v26  ;;  %1479 = vmatmul.msk.f32.vlgmr.msrb.gmra.mxu1 %vm116_vm5, %v628_v26 }
0x12f4   :  { %1002 = vmatpush.msra.mxu0 %v1878_v45 }
0x12f6   :  { %1003 = vmatpush.msra.mxu0 %v1880_v46 }
0x12f8   :  { %1004 = vmatpush.msra.mxu0 %v1884_v47 }
0x12fa   :  { %1005 = vmatpush.msra.mxu0 %v1888_v48 }
0x12fb   :  { %1465 = vmatmul.msk.f32.vlgmr.msrb.gmra.mxu0 %vm116_vm5, %v813_v27 }
0x12fc   :  { %1176 = vmatpush.msrb.mxu0 %v1878_v45 }
0x12fe   :  { %1177 = vmatpush.msrb.mxu0 %v1880_v46 }
0x1300   :  { %1178 = vmatpush.msrb.mxu0 %v1884_v47 }
0x1302   :  { %1179 = vmatpush.msrb.mxu0 %v1888_v48 }
0x1370   :  { %v1974_v28 = vpop.f32.mrf.mxu0 }
0x1378   :  { %v833_v29 = vpop.f32.mrf.mxu0 }
0x1379   :  { %v834_v14 = vadd.f32 %v833_v29, %v1915_v20 }
0x137b   :  { %857 = vrot.lane.b32.xlu1 %v834_v14, %s1730_s2  ;;  %v836_v10 = vadd.f32 %v834_v14, %v809_v30 }
0x137d   :  { %v1466_v11 = vmul.f32 -1.442695, %v836_v10 }
0x137f   :  { %1546 = vpow2.f32 %v1466_v11  ;;  %v982_v11 = vpop.f32.mrf.mxu3 }
0x1385   :  { %v1547_v31 = vpop.eup %1546 }
0x1386   :  { %v840_v13 = vadd.f32 1.0, %v1547_v31  ;;  %v983_v31 = vadd.f32 %v982_v11, %v1944_v4 }
0x1388   :  { %1548 = vrcp.f32 %v840_v13  ;;  %v852_v38 = vand.u32 2147483648, %v840_v13  ;;  %vm846_vm4 = vweird.f32 %v840_v13  ;;  %v850_v39 = vand.u32 2147483647, %v840_v13 }
0x138a   :  { %v853_v41 = vor.u32 1.1754944e-38, %v852_v38  ;;  %vm851_vm7 = vcmp.eq.f32.partialorder %v850_v39, 8.507059e+37 }
0x138e   :  { %v1549_v32 = vpop.eup %1548 }
0x138f   :  { %v842_v33 = vmul.f32 %v1549_v32, %v840_v13  ;;  %vm847_vm3 = vweird.f32 %v1549_v32 }
0x1390   :  { %vm848_vm6 = vmor %vm846_vm4, %vm847_vm3 }
0x1391   :  { %v843_v34 = vsub.f32 1.0, %v842_v33 }
0x1393   :  { %v844_v35 = vmul.f32 %v1549_v32, %v843_v34 }
0x1395   :  { %v845_v36 = vadd.f32 %v1549_v32, %v844_v35 }
0x1397   :  { %v849_v40 = vsel %vm848_vm6, %v1549_v32, %v845_v36 }
0x1398   :  { %v854_v43 = vsel %vm851_vm7, %v853_v41, %v849_v40 }
0x13ed   :  { %v858_v42 = vpop.permute.xlu1 %857 }
0x13ee   :  { %v860_v44 = vmul.f32 %v858_v42, %v854_v43 }
0x13f0   :  { %862 = vrot.lane.b32.xlu2 %v860_v44, %s1730_s2 }
0x144a   :  { %v863_v7 = vpop.permute.xlu2 %862 }
0x144b   :  { %v865_v49 = vadd.f32 %v863_v7, %v809_v30 }
0x144d   :  { %1550 = vtanh.f32 %v865_v49 }
0x1453   :  { %v1551_v50 = vpop.eup %1550 }
0x1454   :  { %v867_v51 = vsub.f32 %v790_v22, %v1551_v50 }
0x1456   :  { %869 = vrot.lane.b32.xlu0 %v867_v51, %s1731_s3 }
0x14c8   :  { %v870_v52 = vpop.permute.xlu0 %869 }
0x14c9   :  { %v872_v53 = vmul.f32 %v870_v52, %v854_v43 }
0x14cb   :  { %874 = vrot.lane.b32.xlu1 %v872_v53, %s1732_s17 }
0x153d   :  { %v875_v54 = vpop.permute.xlu1 %874 }
0x153e   :  { %v877_v55 = vadd.f32 %v1551_v50, %v875_v54 }
0x1540   :  { %899 = vrot.lane.b32.xlu2 %v877_v55, %s1730_s2 }
0x159a   :  { %v900_v6 = vpop.permute.xlu2 %899 }
0x159b   :  { %1468 = vmatmul.msk.f32.vlgmr.msrb.gmra.mxu2 %vm116_vm5, %v900_v6 }
0x159c   :  { %1263 = vmatpush.msrb.mxu2 %v1878_v45 }
0x159e   :  { %1264 = vmatpush.msrb.mxu2 %v1880_v46 }
0x15a0   :  { %1265 = vmatpush.msrb.mxu2 %v1884_v47 }
0x15a2   :  { %1266 = vmatpush.msrb.mxu2 %v1888_v48 }
0x161e   :  { %v920_v56 = vpop.f32.mrf.mxu2 }
0x161f   :  { %v921_v57 = vadd.f32 %v920_v56, %v1915_v20 }
0x1621   :  { %944 = vrot.lane.b32.xlu0 %v921_v57, %s1730_s2  ;;  %v923_v60 = vadd.f32 %v921_v57, %v896_v59  ;;  %v1069_v57 = vpop.f32.mrf.mxu1 }
0x1622   :  { %v1070_v58 = vadd.f32 %v1069_v57, %v1944_v4 }
0x1623   :  { %v1469_v61 = vmul.f32 -1.442695, %v923_v60 }
0x1625   :  { %1552 = vpow2.f32 %v1469_v61 }
0x162b   :  { %v1553_v62 = vpop.eup %1552 }
0x162c   :  { %v927_v63 = vadd.f32 1.0, %v1553_v62 }
0x162e   :  { %1554 = vrcp.f32 %v927_v63  ;;  %v939_v8 = vand.u32 2147483648, %v927_v63  ;;  %vm933_vm9 = vweird.f32 %v927_v63  ;;  %v937_v37 = vand.u32 2147483647, %v927_v63 }
0x1630   :  { %v940_v16 = vor.u32 1.1754944e-38, %v939_v8  ;;  %vm938_vm11 = vcmp.eq.f32.partialorder %v937_v37, 8.507059e+37 }
0x1634   :  { %v1555_v0 = vpop.eup %1554 }
0x1635   :  { %v929_v1 = vmul.f32 %v1555_v0, %v927_v63  ;;  %vm934_vm8 = vweird.f32 %v1555_v0 }
0x1636   :  { %vm935_vm10 = vmor %vm933_vm9, %vm934_vm8 }
0x1637   :  { %v930_v2 = vsub.f32 1.0, %v929_v1 }
0x1639   :  { %v931_v3 = vmul.f32 %v1555_v0, %v930_v2 }
0x163b   :  { %v932_v5 = vadd.f32 %v1555_v0, %v931_v3 }
0x163d   :  { %v936_v15 = vsel %vm935_vm10, %v1555_v0, %v932_v5 }
0x163e   :  { %v941_v18 = vsel %vm938_vm11, %v940_v16, %v936_v15 }
0x1693   :  { %v945_v17 = vpop.permute.xlu0 %944 }
0x1694   :  { %v947_v19 = vmul.f32 %v945_v17, %v941_v18 }
0x1696   :  { %949 = vrot.lane.b32.xlu1 %v947_v19, %s1730_s2 }
0x1708   :  { %v950_v21 = vpop.permute.xlu1 %949 }
0x1709   :  { %v952_v22 = vadd.f32 %v950_v21, %v896_v59 }
0x170b   :  { %1556 = vtanh.f32 %v952_v22 }
0x1711   :  { %v1557_v23 = vpop.eup %1556 }
0x1712   :  { %v954_v24 = vsub.f32 %v877_v55, %v1557_v23 }
0x1714   :  { %956 = vrot.lane.b32.xlu2 %v954_v24, %s1731_s3 }
0x176e   :  { %v957_v26 = vpop.permute.xlu2 %956 }
0x176f   :  { %v959_v27 = vmul.f32 %v957_v26, %v941_v18 }
0x1771   :  { %961 = vrot.lane.b32.xlu0 %v959_v27, %s1732_s17 }
0x17e3   :  { %v962_v29 = vpop.permute.xlu0 %961 }
0x17e4   :  { %v964_v14 = vadd.f32 %v1557_v23, %v962_v29 }
0x17e6   :  { %986 = vrot.lane.b32.xlu1 %v964_v14, %s1730_s2 }
0x1858   :  { %v987_v9 = vpop.permute.xlu1 %986 }
0x1859   :  { %1471 = vmatmul.msk.f32.vlgmr.msra.gmra.mxu0 %vm116_vm5, %v987_v9 }
0x185a   :  { %1356 = vmatpush.msra.mxu0 %v1878_v45 }
0x185c   :  { %1357 = vmatpush.msra.mxu0 %v1880_v46 }
0x185e   :  { %1358 = vmatpush.msra.mxu0 %v1884_v47 }
0x1860   :  { %1359 = vmatpush.msra.mxu0 %v1888_v48 }
0x18d6   :  { %v1007_v30 = vpop.f32.mrf.mxu0 }
0x18d7   :  { %v1008_v10 = vadd.f32 %v1007_v30, %v1915_v20 }
0x18d9   :  { %1031 = vrot.lane.b32.xlu2 %v1008_v10, %s1730_s2  ;;  %v1010_v13 = vadd.f32 %v1008_v10, %v983_v31  ;;  %v1156_v10 = vpop.f32.mrf.mxu3 }
0x18da   :  { %v1157_v11 = vadd.f32 %v1156_v10, %v1944_v4 }
0x18db   :  { %v1472_v32 = vmul.f32 -1.442695, %v1010_v13 }
0x18dd   :  { %1558 = vpow2.f32 %v1472_v32 }
0x18e3   :  { %v1559_v33 = vpop.eup %1558 }
0x18e4   :  { %v1014_v34 = vadd.f32 1.0, %v1559_v33 }
0x18e6   :  { %1560 = vrcp.f32 %v1014_v34  ;;  %v1026_v48 = vand.u32 2147483648, %v1014_v34  ;;  %vm1020_vm13 = vweird.f32 %v1014_v34  ;;  %v1024_v38 = vand.u32 2147483647, %v1014_v34 }
0x18e8   :  { %v1027_v40 = vor.u32 1.1754944e-38, %v1026_v48  ;;  %vm1025_vm15 = vcmp.eq.f32.partialorder %v1024_v38, 8.507059e+37 }
0x18ec   :  { %v1561_v45 = vpop.eup %1560 }
0x18ed   :  { %v1016_v46 = vmul.f32 %v1561_v45, %v1014_v34  ;;  %vm1021_vm12 = vweird.f32 %v1561_v45 }
0x18ee   :  { %vm1022_vm14 = vmor %vm1020_vm13, %vm1021_vm12 }
0x18ef   :  { %v1017_v35 = vsub.f32 1.0, %v1016_v46 }
0x18f1   :  { %v1018_v47 = vmul.f32 %v1561_v45, %v1017_v35 }
0x18f3   :  { %v1019_v36 = vadd.f32 %v1561_v45, %v1018_v47 }
0x18f5   :  { %v1023_v39 = vsel %vm1022_vm14, %v1561_v45, %v1019_v36 }
0x18f6   :  { %v1028_v42 = vsel %vm1025_vm15, %v1027_v40, %v1023_v39 }
0x1933   :  { %v1032_v41 = vpop.permute.xlu2 %1031 }
0x1934   :  { %v1034_v43 = vmul.f32 %v1032_v41, %v1028_v42 }
0x1936   :  { %1036 = vrot.lane.b32.xlu0 %v1034_v43, %s1730_s2 }
0x19a8   :  { %v1037_v44 = vpop.permute.xlu0 %1036 }
0x19a9   :  { %v1039_v7 = vadd.f32 %v1037_v44, %v983_v31 }
0x19ab   :  { %1562 = vtanh.f32 %v1039_v7 }
0x19b1   :  { %v1563_v49 = vpop.eup %1562 }
0x19b2   :  { %v1041_v50 = vsub.f32 %v964_v14, %v1563_v49 }
0x19b4   :  { %1043 = vrot.lane.b32.xlu1 %v1041_v50, %s1731_s3  ;;  %v1594_v50 = vld [vmem:[#allocation7 + $0x1] sm:$0x1] }
0x1a26   :  { %v1044_v51 = vpop.permute.xlu1 %1043 }
0x1a27   :  { %v1046_v52 = vmul.f32 %v1044_v51, %v1028_v42  ;;  %v649_v51 = vadd.f32 %v1594_v50, %v1974_v28 }
0x1a29   :  { %1048 = vrot.lane.b32.xlu2 %v1046_v52, %s1732_s17  ;;  %v652_v52 = vrot.slane %v649_v51, 1 }
0x1a83   :  { %v1049_v53 = vpop.permute.xlu2 %1048 }
0x1a84   :  { %v1051_v54 = vadd.f32 %v1563_v49, %v1049_v53 }
0x1a86   :  { %1073 = vrot.lane.b32.xlu0 %v1051_v54, %s1730_s2 }
0x1af8   :  { %v1074_v55 = vpop.permute.xlu0 %1073 }
0x1af9   :  { %1474 = vmatmul.msk.f32.vlgmr.msra.gmra.mxu2 %vm116_vm5, %v1074_v55  ;;  %v654_v55 = vadd.f32 %v652_v52, %v1786_v12 }
0x1b7c   :  { %v1094_v6 = vpop.f32.mrf.mxu2 }
0x1b7d   :  { %v1095_v56 = vadd.f32 %v1094_v6, %v1915_v20  ;;  %v1461_v6 = vmul.f32 -1.442695, %v654_v55 }
0x1b7f   :  { %1118 = vrot.lane.b32.xlu1 %v1095_v56, %s1730_s2  ;;  %v1097_v59 = vadd.f32 %v1095_v56, %v1070_v58 }
0x1b81   :  { %v1475_v60 = vmul.f32 -1.442695, %v1097_v59 }
0x1b83   :  { %1564 = vpow2.f32 %v1475_v60 }
0x1b89   :  { %v1565_v61 = vpop.eup %1564 }
0x1b8a   :  { %v1101_v62 = vadd.f32 1.0, %v1565_v61 }
0x1b8c   :  { %1566 = vrcp.f32 %v1101_v62  ;;  %v1113_v5 = vand.u32 2147483648, %v1101_v62  ;;  %vm1107_vm1 = vweird.f32 %v1101_v62  ;;  %v1111_v8 = vand.u32 2147483647, %v1101_v62 }
0x1b8e   :  { %v1114_v15 = vor.u32 1.1754944e-38, %v1113_v5  ;;  %vm1112_vm3 = vcmp.eq.f32.partialorder %v1111_v8, 8.507059e+37 }
0x1b92   :  { %v1567_v63 = vpop.eup %1566 }
0x1b93   :  { %v1103_v0 = vmul.f32 %v1567_v63, %v1101_v62  ;;  %vm1108_vm0 = vweird.f32 %v1567_v63 }
0x1b94   :  { %vm1109_vm2 = vmor %vm1107_vm1, %vm1108_vm0 }
0x1b95   :  { %v1104_v1 = vsub.f32 1.0, %v1103_v0 }
0x1b97   :  { %v1105_v2 = vmul.f32 %v1567_v63, %v1104_v1 }
0x1b99   :  { %v1106_v3 = vadd.f32 %v1567_v63, %v1105_v2 }
0x1b9b   :  { %v1110_v37 = vsel %vm1109_vm2, %v1567_v63, %v1106_v3 }
0x1b9c   :  { %v1115_v17 = vsel %vm1112_vm3, %v1114_v15, %v1110_v37 }
0x1bf1   :  { %v1119_v16 = vpop.permute.xlu1 %1118 }
0x1bf2   :  { %v1121_v18 = vmul.f32 %v1119_v16, %v1115_v17 }
0x1bf4   :  { %1123 = vrot.lane.b32.xlu2 %v1121_v18, %s1730_s2 }
0x1c4e   :  { %v1124_v19 = vpop.permute.xlu2 %1123 }
0x1c4f   :  { %v1126_v21 = vadd.f32 %v1124_v19, %v1070_v58 }
0x1c51   :  { %1568 = vtanh.f32 %v1126_v21 }
0x1c57   :  { %v1569_v22 = vpop.eup %1568 }
0x1c58   :  { %v1128_v23 = vsub.f32 %v1051_v54, %v1569_v22 }
0x1c5a   :  { %1130 = vrot.lane.b32.xlu0 %v1128_v23, %s1731_s3 }
0x1ccc   :  { %v1131_v24 = vpop.permute.xlu0 %1130 }
0x1ccd   :  { %v1133_v26 = vmul.f32 %v1131_v24, %v1115_v17 }
0x1ccf   :  { %1135 = vrot.lane.b32.xlu1 %v1133_v26, %s1732_s17  ;;  %v1243_v26 = vpop.f32.mrf.mxu1 }
0x1d41   :  { %v1136_v27 = vpop.permute.xlu1 %1135 }
0x1d42   :  { %v1138_v29 = vadd.f32 %v1569_v22, %v1136_v27  ;;  %v1244_v27 = vadd.f32 %v1243_v26, %v1944_v4 }
0x1d44   :  { %1160 = vrot.lane.b32.xlu2 %v1138_v29, %s1730_s2 }
0x1d9e   :  { %v1161_v14 = vpop.permute.xlu2 %1160 }
0x1d9f   :  { %1477 = vmatmul.msk.f32.vlgmr.msrb.gmra.mxu0 %vm116_vm5, %v1161_v14 }
0x1e1c   :  { %v1181_v9 = vpop.f32.mrf.mxu0 }
0x1e1d   :  { %v1182_v30 = vadd.f32 %v1181_v9, %v1915_v20 }
0x1e1f   :  { %1205 = vrot.lane.b32.xlu0 %v1182_v30, %s1730_s2  ;;  %v1184_v31 = vadd.f32 %v1182_v30, %v1157_v11 }
0x1e21   :  { %v1478_v13 = vmul.f32 -1.442695, %v1184_v31 }
0x1e23   :  { %1570 = vpow2.f32 %v1478_v13 }
0x1e29   :  { %v1571_v32 = vpop.eup %1570 }
0x1e2a   :  { %v1188_v33 = vadd.f32 1.0, %v1571_v32 }
0x1e2c   :  { %1572 = vrcp.f32 %v1188_v33  ;;  %v1200_v36 = vand.u32 2147483648, %v1188_v33  ;;  %vm1194_vm6 = vweird.f32 %v1188_v33  ;;  %v1198_v48 = vand.u32 2147483647, %v1188_v33 }
0x1e2e   :  { %v1201_v39 = vor.u32 1.1754944e-38, %v1200_v36  ;;  %vm1199_vm8 = vcmp.eq.f32.partialorder %v1198_v48, 8.507059e+37 }
0x1e32   :  { %v1573_v34 = vpop.eup %1572 }
0x1e33   :  { %v1190_v45 = vmul.f32 %v1573_v34, %v1188_v33  ;;  %vm1195_vm4 = vweird.f32 %v1573_v34 }
0x1e34   :  { %vm1196_vm7 = vmor %vm1194_vm6, %vm1195_vm4  ;;  %vm1417_vm4 = vcmask 253952   ;;  %vm1425_vm6 = vcmask 0  }
0x1e35   :  { %v1191_v46 = vsub.f32 1.0, %v1190_v45 }
0x1e37   :  { %v1192_v35 = vmul.f32 %v1573_v34, %v1191_v46 }
0x1e39   :  { %v1193_v47 = vadd.f32 %v1573_v34, %v1192_v35 }
0x1e3b   :  { %v1197_v38 = vsel %vm1196_vm7, %v1573_v34, %v1193_v47 }
0x1e3c   :  { %v1202_v41 = vsel %vm1199_vm8, %v1201_v39, %v1197_v38 }
0x1e91   :  { %v1206_v40 = vpop.permute.xlu0 %1205 }
0x1e92   :  { %v1208_v42 = vmul.f32 %v1206_v40, %v1202_v41 }
0x1e94   :  { %1210 = vrot.lane.b32.xlu1 %v1208_v42, %s1730_s2 }
0x1f06   :  { %v1211_v43 = vpop.permute.xlu1 %1210 }
0x1f07   :  { %v1213_v44 = vadd.f32 %v1211_v43, %v1157_v11 }
0x1f09   :  { %1574 = vtanh.f32 %v1213_v44 }
0x1f0a   :  { %1576 = vpow2.f32 %v1461_v6 }
0x1f0f   :  { %v1575_v7 = vpop.eup %1574 }
0x1f10   :  { %v1215_v49 = vsub.f32 %v1138_v29, %v1575_v7  ;;  %v1577_v56 = vpop.eup %1576 }
0x1f11   :  { %v658_v57 = vadd.f32 1.0, %v1577_v56 }
0x1f12   :  { %1217 = vrot.lane.b32.xlu2 %v1215_v49, %s1731_s3 }
0x1f13   :  { %1578 = vrcp.f32 %v658_v57  ;;  %v670_v0 = vand.u32 2147483648, %v658_v57  ;;  %vm664_vm10 = vweird.f32 %v658_v57  ;;  %v668_v1 = vand.u32 2147483647, %v658_v57 }
0x1f15   :  { %v671_v3 = vor.u32 1.1754944e-38, %v670_v0  ;;  %vm669_vm12 = vcmp.eq.f32.partialorder %v668_v1, 8.507059e+37 }
0x1f19   :  { %v1579_v58 = vpop.eup %1578 }
0x1f1a   :  { %674 = vrot.lane.b32.xlu2 %v652_v52, %s1730_s2  ;;  %v660_v59 = vmul.f32 %v1579_v58, %v658_v57  ;;  %vm665_vm9 = vweird.f32 %v1579_v58 }
0x1f1b   :  { %vm666_vm11 = vmor %vm664_vm10, %vm665_vm9 }
0x1f1c   :  { %v661_v60 = vsub.f32 1.0, %v660_v59 }
0x1f1e   :  { %v662_v61 = vmul.f32 %v1579_v58, %v661_v60 }
0x1f20   :  { %v663_v28 = vadd.f32 %v1579_v58, %v662_v61 }
0x1f22   :  { %v667_v2 = vsel %vm666_vm11, %v1579_v58, %v663_v28 }
0x1f23   :  { %v672_v8 = vsel %vm669_vm12, %v671_v3, %v667_v2 }
0x1f6c   :  { %v1218_v53 = vpop.permute.xlu2 %1217 }
0x1f6d   :  { %v1220_v54 = vmul.f32 %v1218_v53, %v1202_v41 }
0x1f6f   :  { %1222 = vrot.lane.b32.xlu0 %v1220_v54, %s1732_s17 }
0x1f74   :  { %v675_v5 = vpop.permute.xlu2 %674 }
0x1f75   :  { %v677_v37 = vmul.f32 %v675_v5, %v672_v8 }
0x1fe1   :  { %v1223_v62 = vpop.permute.xlu0 %1222 }
0x1fe2   :  { %v1225_v63 = vadd.f32 %v1575_v7, %v1223_v62 }
0x1fe4   :  { %1247 = vrot.lane.b32.xlu1 %v1225_v63, %s1730_s2 }
0x1fec   :  { %679 = vrot.lane.b32.xlu1 %v677_v37, %s1730_s2 }
0x2056   :  { %v1248_v15 = vpop.permute.xlu1 %1247 }
0x2057   :  { %1480 = vmatmul.msk.f32.vlgmr.msrb.gmra.mxu2 %vm116_vm5, %v1248_v15 }
0x205e   :  { %v680_v16 = vpop.permute.xlu1 %679 }
0x205f   :  { %v682_v17 = vadd.f32 %v680_v16, %v1786_v12 }
0x2061   :  { %1580 = vtanh.f32 %v682_v17  ;;  %v1497_v17 = vld [vmem:[%s2062_s5] ss:$0 sm:$0xff]  ;;  %s1733_s5 = smov [#allocation10]  }
0x2062   :  { %s1432_s23 = sshll.u32 %s1733_s5, 4  ;;  %s1433_s23 = int_to_ptr.vmem [resolvable:$true] %s1432_s23 }
0x2067   :  { %v1581_v18 = vpop.eup %1580 }
0x2068   :  { %v685_v19 = vrot.slane %v1581_v18, 1 }
0x206a   :  { %v687_v21 = vsub.f32 %v1959_v25, %v685_v19 }
0x206c   :  { %v689_v22 = vrot.slane %v687_v21, 7 }
0x206e   :  { %690 = vrot.lane.b32.xlu1 %v689_v22, %s1731_s3 }
0x20da   :  { %v1268_v23 = vpop.f32.mrf.mxu2 }
0x20db   :  { %v1269_v24 = vadd.f32 %v1268_v23, %v1915_v20 }
0x20dd   :  { %1292 = vrot.lane.b32.xlu0 %v1269_v24, %s1730_s2  ;;  %v1271_v29 = vadd.f32 %v1269_v24, %v1244_v27 }
0x20df   :  { %v1481_v14 = vmul.f32 -1.442695, %v1271_v29 }
0x20e0   :  { %v691_v39 = vpop.permute.xlu1 %690 }
0x20e1   :  { %1582 = vpow2.f32 %v1481_v14  ;;  %v693_v40 = vmul.f32 %v691_v39, %v672_v8 }
0x20e7   :  { %v1583_v12 = vpop.eup %1582 }
0x20e8   :  { %v1275_v9 = vadd.f32 1.0, %v1583_v12 }
0x20ea   :  { %1584 = vrcp.f32 %v1275_v9  ;;  %v1287_v13 = vand.u32 2147483648, %v1275_v9  ;;  %vm1281_vm14 = vweird.f32 %v1275_v9  ;;  %v1285_v32 = vand.u32 2147483647, %v1275_v9 }
0x20ec   :  { %v1288_v34 = vor.u32 1.1754944e-38, %v1287_v13  ;;  %vm1286_vm0 = vcmp.eq.f32.partialorder %v1285_v32, 8.507059e+37 }
0x20f0   :  { %v1585_v30 = vpop.eup %1584 }
0x20f1   :  { %v1277_v10 = vmul.f32 %v1585_v30, %v1275_v9  ;;  %vm1282_vm13 = vweird.f32 %v1585_v30 }
0x20f2   :  { %vm1283_vm15 = vmor %vm1281_vm14, %vm1282_vm13 }
0x20f3   :  { %v1278_v25 = vsub.f32 1.0, %v1277_v10 }
0x20f5   :  { %v1279_v11 = vmul.f32 %v1585_v30, %v1278_v25 }
0x20f7   :  { %v1280_v31 = vadd.f32 %v1585_v30, %v1279_v11 }
0x20f9   :  { %v1284_v33 = vsel %vm1283_vm15, %v1585_v30, %v1280_v31 }
0x20fa   :  { %v1289_v46 = vsel %vm1286_vm0, %v1288_v34, %v1284_v33 }
0x214f   :  { %v1293_v45 = vpop.permute.xlu0 %1292 }
0x2150   :  { %v1295_v35 = vmul.f32 %v1293_v45, %v1289_v46 }
0x2152   :  { %1297 = vrot.lane.b32.xlu2 %v1295_v35, %s1730_s2 }
0x21ac   :  { %v1298_v47 = vpop.permute.xlu2 %1297 }
0x21ad   :  { %v1300_v36 = vadd.f32 %v1298_v47, %v1244_v27 }
0x21af   :  { %1586 = vtanh.f32 %v1300_v36 }
0x21b5   :  { %v1587_v48 = vpop.eup %1586 }
0x21b6   :  { %v1302_v38 = vsub.f32 %v1225_v63, %v1587_v48 }
0x21b8   :  { %1304 = vrot.lane.b32.xlu0 %v1302_v38, %s1731_s3 }
0x21c0   :  { %695 = vrot.lane.b32.xlu0 %v693_v40, %s1732_s17 }
0x222a   :  { %v1305_v41 = vpop.permute.xlu0 %1304 }
0x222b   :  { %v1307_v42 = vmul.f32 %v1305_v41, %v1289_v46 }
0x222d   :  { %1309 = vrot.lane.b32.xlu2 %v1307_v42, %s1732_s17 }
0x2232   :  { %v696_v43 = vpop.permute.xlu0 %695 }
0x2233   :  { %v698_v44 = vadd.f32 %v1581_v18, %v696_v43 }
0x2235   :  { %v1314_v7 = vrot.slane %v698_v44, 7 }
0x2237   :  { %1315 = vrot.lane.b32.xlu2 %v1314_v7, %s1730_s2 }
0x2287   :  { %v1310_v49 = vpop.permute.xlu2 %1309 }
0x2288   :  { %v1312_v50 = vadd.f32 %v1587_v48, %v1310_v49 }
0x228a   :  { %1340 = vrot.lane.b32.xlu1 %v1312_v50, %s1730_s2 }
0x2291   :  { %v1316_v51 = vpop.permute.xlu2 %1315 }
0x2292   :  { %1482 = vmatmul.msk.f32.vlgmr.msrb.gmra.mxu3 %vm116_vm5, %v1316_v51 }
0x22fc   :  { %v1341_v52 = vpop.permute.xlu1 %1340 }
0x22fd   :  { %1483 = vmatmul.msk.f32.vlgmr.msra.gmra.mxu0 %vm116_vm5, %v1341_v52 }
0x2315   :  { %v1336_v55 = vpop.f32.mrf.mxu3 }
0x2316   :  { %v1337_v6 = vadd.f32 %v1336_v55, %v1944_v4 }
0x237a   :  { %v1361_v53 = vpop.f32.mrf.mxu0 }
0x237b   :  { %v1362_v54 = vadd.f32 %v1361_v53, %v1915_v20 }
0x237d   :  { %1385 = vrot.lane.b32.xlu0 %v1362_v54, %s1730_s2  ;;  %v1364_v56 = vadd.f32 %v1362_v54, %v1337_v6 }
0x237f   :  { %v1484_v57 = vmul.f32 -1.442695, %v1364_v56 }
0x2381   :  { %1588 = vpow2.f32 %v1484_v57 }
0x2387   :  { %v1589_v58 = vpop.eup %1588 }
0x2388   :  { %v1368_v59 = vadd.f32 1.0, %v1589_v58 }
0x238a   :  { %1590 = vrcp.f32 %v1368_v59  ;;  %v1380_v0 = vand.u32 2147483648, %v1368_v59  ;;  %vm1374_vm1 = vweird.f32 %v1368_v59  ;;  %v1378_v20 = vand.u32 2147483647, %v1368_v59 }
0x238c   :  { %v1381_v2 = vor.u32 1.1754944e-38, %v1380_v0  ;;  %vm1379_vm3 = vcmp.eq.f32.partialorder %v1378_v20, 8.507059e+37 }
0x2390   :  { %v1591_v60 = vpop.eup %1590 }
0x2391   :  { %v1370_v61 = vmul.f32 %v1591_v60, %v1368_v59  ;;  %vm1375_vm5 = vweird.f32 %v1591_v60 }
0x2392   :  { %vm1376_vm2 = vmor %vm1374_vm1, %vm1375_vm5 }
0x2393   :  { %v1371_v62 = vsub.f32 1.0, %v1370_v61 }
0x2395   :  { %v1372_v28 = vmul.f32 %v1591_v60, %v1371_v62 }
0x2397   :  { %v1373_v63 = vadd.f32 %v1591_v60, %v1372_v28 }
0x2399   :  { %v1377_v1 = vsel %vm1376_vm2, %v1591_v60, %v1373_v63 }
0x239a   :  { %v1382_v4 = vsel %vm1379_vm3, %v1381_v2, %v1377_v1 }
0x23ef   :  { %v1386_v3 = vpop.permute.xlu0 %1385 }
0x23f0   :  { %v1388_v5 = vmul.f32 %v1386_v3, %v1382_v4 }
0x23f2   :  { %1390 = vrot.lane.b32.xlu1 %v1388_v5, %s1730_s2 }
0x23fa   :  { %1409 = vrot.lane.b32.xlu1 %v1497_v17, %s1730_s2 }
0x2402   :  { %1421 = vrot.lane.b32.xlu1 %v1497_v17, %s1731_s3 }
0x2464   :  { %v1391_v8 = vpop.permute.xlu1 %1390 }
0x2465   :  { %v1393_v37 = vadd.f32 %v1391_v8, %v1337_v6 }
0x2467   :  { %1592 = vtanh.f32 %v1393_v37 }
0x246c   :  { %v1410_v22 = vpop.permute.xlu1 %1409 }
0x246d   :  { %v1593_v15 = vpop.eup %1592 }
0x246e   :  { %v1395_v16 = vsub.f32 %v1312_v50, %v1593_v15 }
0x2470   :  { %1397 = vrot.lane.b32.xlu2 %v1395_v16, %s1731_s3 }
0x2474   :  { %v1422_v29 = vpop.permute.xlu1 %1421 }
0x24ca   :  { %v1398_v18 = vpop.permute.xlu2 %1397 }
0x24cb   :  { %v1400_v19 = vmul.f32 %v1398_v18, %v1382_v4 }
0x24cd   :  { %1402 = vrot.lane.b32.xlu0 %v1400_v19, %s1732_s17 }
0x253f   :  { %v1403_v21 = vpop.permute.xlu0 %1402 }
0x2540   :  { %v1405_v23 = vadd.f32 %v1593_v15, %v1403_v21 }
0x2542   :  { %v1412_v24 = vmul.f32 %v1410_v22, %v1405_v23 }
0x2544   :  { %1414 = vrot.lane.b32.xlu2 %v1412_v24, %s1730_s2 }
0x259e   :  { %v1415_v26 = vpop.permute.xlu2 %1414 }
0x259f   :  { %v1418_v27 = vsel %vm1417_vm4, %v1415_v26, 0.0 }
0x25a0   :  { %1419 = vadd.xlane.f32.xlu0 %v1418_v27 }
0x2613   :  { %v1420_v14 = vpop.xlane.xlu0 %1419 }
0x2614   :  { %v1424_v12 = vadd.f32 %v1422_v29, %v1420_v14 }
0x2616   :  { %1426 = vst.msk [vmem:[#allocation10] sm:$0x1] %vm1425_vm6, %v1424_v12 }
0x2617   :  { %1437 = dma.vmem_to_hbm [thread:$0]  %s1433_s23, 16, %s1435_s26, [#allocation4]  }
0x2618   :  { %1721 = dma.done.wait [#allocation4], 16  }
0x2619   :  { %1722 = vsyncadd [#allocation4], 4294967280 }
0x261a   :  { %1442 = vsyncpa [#allocation3], 1 }
0x261b   :  { %1443 = vsyncpa [#allocation6], 1 }
0x261c   :  { %1444 = vsyncpa [#allocation9], 1 }
0x261d   :  { %1445 = vsyncpa [#allocation4], 1 }

</bundles_post_ra>
